<compile_context>
chip_gen: v6e
topology: v6e:2x2x1
jax: 0.10.0
libtpu: 0.0.40
codegen_flags: <defaults>
</compile_context>

<pallas_src>
import math

import jax
import jax.numpy as jnp
from jax.experimental import pallas as pl
from jax.experimental.pallas import tpu as pltpu

BN_EPS = 1e-5


# ------------------------------ Pallas kernel ------------------------------- #

def _make_cnn4_kernel(batch, layers):
    """Fused forward: [conv(3-tap, stride 2) + BN(train) + ReLU] x layers + Linear."""

    def kernel(*refs):
        x_ref = refs[0]
        layer_refs = refs[1:1 + 3 * layers]
        wc_ref = refs[1 + 3 * layers]
        bc_ref = refs[2 + 3 * layers]
        o_ref = refs[3 + 3 * layers]

        # Activation value, rows flattened as r = n * W_l + w, channels on lanes.
        a = x_ref[...].astype(jnp.float32)
        w_in = a.shape[0] // batch

        for l in range(layers):
            w_ref = layer_refs[3 * l]        # (3*Cin, Cout), tap-major rows
            g_ref = layer_refs[3 * l + 1]    # (1, Cout) BN gamma
            be_ref = layer_refs[3 * l + 2]   # (1, Cout) BN beta
            cin = w_ref.shape[0] // 3
            m_in = a.shape[0]
            w_out = w_in // 2
            m_out = batch * w_out
            dot_dt = w_ref.dtype             # bf16 for hidden layers, f32 for layer 0

            # ---- in-kernel im2col: 0/1 selection matrices for the 3 stride-2 taps ----
            r_idx = jax.lax.broadcasted_iota(jnp.int32, (m_out, m_in), 0)
            c_idx = jax.lax.broadcasted_iota(jnp.int32, (m_out, m_in), 1)
            not_left_edge = (r_idx % w_out) != 0          # w==0 rows read the zero pad
            s_prev = ((c_idx == 2 * r_idx - 1) & not_left_edge)   # tap kw=0: x[2w-1]
            s_even = (c_idx == 2 * r_idx)                         # tap kw=1: x[2w]
            s_odd = (c_idx == 2 * r_idx + 1)                      # tap kw=2: x[2w+1]
            s_prev = s_prev.astype(jnp.float32).astype(dot_dt)
            s_even = s_even.astype(jnp.float32).astype(dot_dt)
            s_odd = s_odd.astype(jnp.float32).astype(dot_dt)

            if cin == 1:
                # First layer (Cin==1): broadcast against the three (1, Cout) weight
                # rows, then gather with the selection matmuls.  Kept in f32 (tiny).
                b0 = a * w_ref[0:1, :]
                b1 = a * w_ref[1:2, :]
                b2 = a * w_ref[2:3, :]
                acc = (jnp.dot(s_prev, b0, preferred_element_type=jnp.float32)
                       + jnp.dot(s_even, b1, preferred_element_type=jnp.float32)
                       + jnp.dot(s_odd, b2, preferred_element_type=jnp.float32))
            else:
                # Hidden layers: bf16 MXU operands, f32 accumulation.
                a_q = a.astype(dot_dt)
                t0 = jnp.dot(s_prev, a_q, preferred_element_type=jnp.float32).astype(dot_dt)
                t1 = jnp.dot(s_even, a_q, preferred_element_type=jnp.float32).astype(dot_dt)
                t2 = jnp.dot(s_odd, a_q, preferred_element_type=jnp.float32).astype(dot_dt)
                acc = (jnp.dot(t0, w_ref[0:cin, :], preferred_element_type=jnp.float32)
                       + jnp.dot(t1, w_ref[cin:2 * cin, :], preferred_element_type=jnp.float32)
                       + jnp.dot(t2, w_ref[2 * cin:3 * cin, :], preferred_element_type=jnp.float32))

            # ---- BatchNorm (training batch stats, biased var, eps=1e-5) + ReLU ----
            # Conv bias is omitted: it is cancelled exactly by the mean subtraction.
            mean = jnp.sum(acc, axis=0, keepdims=True) * (1.0 / m_out)
            diff = acc - mean
            var = jnp.sum(diff * diff, axis=0, keepdims=True) * (1.0 / m_out)
            scale = g_ref[...] * jax.lax.rsqrt(var + BN_EPS)
            shift = be_ref[...] - mean * scale
            a = jnp.maximum(acc * scale + shift, 0.0)
            w_in = w_out

        # ---- Linear(hidden, 1) epilogue (lane reduce; no second pallas_call) ----
        logits = jnp.sum(a * wc_ref[...], axis=1, keepdims=True) + bc_ref[...]
        o_ref[...] = logits.astype(o_ref.dtype)

    return kernel


def _full_spec(arr):
    return pl.BlockSpec(arr.shape, lambda i: (0,) * arr.ndim)


# ------------------------------ Host wrapper -------------------------------- #

def cnn4_forward(x_nchw, conv_params, clf_params):
    N, C, H, W = x_nchw.shape
    layers = len(conv_params)
    hidden = conv_params[0]["w"].shape[0]
    assert H == 1, "CNN4.forward's squeeze().permute(0,2,1) requires a singleton H dim"
    assert C == conv_params[0]["w"].shape[1]
    assert W % (2 ** layers) == 0

    # NCHW with C == H == 1  ->  (N*W, 1) rows, row index = n*W + w.
    x_rows = x_nchw.astype(jnp.float32).reshape(N * W, 1)

    args = [x_rows]
    for p in conv_params:
        cout, cin = p["w"].shape[0], p["w"].shape[1]
        # H == 1: the kh=0/2 kernel rows only multiply zero padding -> keep kh=1 row.
        # Layout (kw, cin, cout) tap-major: rows [k*cin:(k+1)*cin] are tap kw=k.
        wmat = jnp.transpose(p["w"][:, :, 1, :], (2, 1, 0)).reshape(3 * cin, cout)
        wmat = wmat.astype(jnp.float32 if cin == 1 else jnp.bfloat16)
        # NOTE: conv bias p["b"] is intentionally not passed to the kernel --
        # training-mode BN's mean subtraction cancels a per-channel bias exactly.
        args += [wmat,
                 p["gamma"].reshape(1, cout).astype(jnp.float32),
                 p["beta"].reshape(1, cout).astype(jnp.float32)]
    wc, bc = clf_params
    args += [wc.reshape(1, hidden).astype(jnp.float32),
             bc.reshape(1, 1).astype(jnp.float32)]

    Wf = W // (2 ** layers)
    out = pl.pallas_call(
        _make_cnn4_kernel(N, layers),
        out_shape=jax.ShapeDtypeStruct((N * Wf, 1), jnp.float32),
        grid=(1,),
        in_specs=[_full_spec(a) for a in args],
        out_specs=pl.BlockSpec((N * Wf, 1), lambda i: (0, 0)),
        compiler_params=pltpu.CompilerParams(dimension_semantics=("arbitrary",)),
    )(*args)
    # == unflatten(Linear(flatten(squeeze(x).permute(0,2,1)))).squeeze()
    return out.reshape(N, Wf)


# --------------------------- Parameter initializer --------------------------- #

def init_params(key, hidden, layers, channels=1):
    """Deterministic init matching the PyTorch module's __init__ recipes."""
    conv_params = []
    cin = channels
    for _ in range(layers):
        key, k_w, k_g = jax.random.split(key, 3)
        fan_in, fan_out = cin * 9, hidden * 9
        bound = math.sqrt(6.0 / (fan_in + fan_out))           # xavier_uniform, gain=1
        w = jax.random.uniform(k_w, (hidden, cin, 3, 3), jnp.float32, -bound, bound)
        conv_params.append(dict(
            w=w,                                              # OIHW (PyTorch layout)
            b=jnp.zeros((hidden,), jnp.float32),              # conv bias = 0
            gamma=jax.random.uniform(k_g, (hidden,), jnp.float32, 0.0, 1.0),  # BN weight ~ U(0,1)
            beta=jnp.zeros((hidden,), jnp.float32),           # BN bias = 0
        ))
        cin = hidden
    key, k_c = jax.random.split(key)
    bound = math.sqrt(6.0 / (hidden + 1))
    wc = jax.random.uniform(k_c, (1, hidden), jnp.float32, -bound, bound)  # Linear weight
    bc = jnp.zeros((1,), jnp.float32)                                       # Linear bias = 0
    return conv_params, (wc, bc)


# --------------------------- Pure-JAX references ----------------------------- #

def reference_forward(x_nchw, conv_params, clf_params, mxu_dtype=None):
    """Pure-JAX reference.  If mxu_dtype is set, conv operands of the hidden
    (Cin>1) layers are rounded to that dtype (accumulation stays f32), mirroring
    the kernel's MXU input precision."""
    x = jnp.transpose(x_nchw, (0, 2, 3, 1)).astype(jnp.float32)
    for p in conv_params:
        w_hwio = jnp.transpose(p["w"], (2, 3, 1, 0)).astype(jnp.float32)
        xin, win = x, w_hwio
        if mxu_dtype is not None and p["w"].shape[1] > 1:
            xin = xin.astype(mxu_dtype).astype(jnp.float32)
            win = win.astype(mxu_dtype).astype(jnp.float32)
        y = jax.lax.conv_general_dilated(
            xin, win, window_strides=(1, 2), padding=[(1, 1), (1, 1)],
            dimension_numbers=("NHWC", "HWIO", "NHWC"))
        y = y + p["b"]
        mean = jnp.mean(y, axis=(0, 1, 2), keepdims=True)
        var = jnp.mean((y - mean) ** 2, axis=(0, 1, 2), keepdims=True)
        y = (y - mean) * jax.lax.rsqrt(var + BN_EPS) * p["gamma"] + p["beta"]
        x = jnp.maximum(y, 0.0)
    N, H, Wf, Ch = x.shape
    feats = x.reshape(N, Wf, Ch)
    wc, bc = clf_params
    return (feats.reshape(N * Wf, Ch) @ wc.T + bc).reshape(N, Wf)


# ---------------------------------- Main ------------------------------------ #

if __name__ == "__main__":
    hidden_size = 32
    layers = 4
    N, C, H, W = 2, 1, 1, 64          # channels=1 as in ConvBase; H=1 so squeeze -> 3D

    key = jax.random.PRNGKey(0)
    k_x, k_p = jax.random.split(key)
    x = jax.random.normal(k_x, (N, C, H, W), jnp.float32)
    conv_params, clf_params = init_params(k_p, hidden_size, layers, channels=C)

    out = jax.block_until_ready(cnn4_forward(x, conv_params, clf_params))

    ref_f32 = reference_forward(x, conv_params, clf_params)
    ref_mxu = reference_forward(x, conv_params, clf_params, mxu_dtype=jnp.bfloat16)

    assert out.shape == (N, W // (2 ** layers)), out.shape
    assert bool(jnp.all(jnp.isfinite(out)))
    # Tight check vs. a reference with matched (bf16) MXU operand precision.
    assert bool(jnp.allclose(out, ref_mxu, atol=5e-3, rtol=5e-3)), \
        f"max abs diff vs matched-precision ref: {float(jnp.max(jnp.abs(out - ref_mxu)))}"
    # Loose check vs. the full-f32 reference (bounds bf16 MXU drift over 4 layers).
    assert bool(jnp.allclose(out, ref_f32, atol=1e-1, rtol=1e-1)), \
        f"max abs diff vs f32 ref: {float(jnp.max(jnp.abs(out - ref_f32)))}"

    print("KERNEL_OK")
</pallas_src>

<mosaic_0001>
module attributes {stable_mosaic.version = 11 : i64} {
  func.func @kernel(%arg0: i32, %arg1: memref<128x1xf32, #tpu.memory_space<vmem>>, %arg2: memref<3x32xf32, #tpu.memory_space<vmem>>, %arg3: memref<1x32xf32, #tpu.memory_space<vmem>>, %arg4: memref<1x32xf32, #tpu.memory_space<vmem>>, %arg5: memref<96x32xbf16, #tpu.memory_space<vmem>>, %arg6: memref<1x32xf32, #tpu.memory_space<vmem>>, %arg7: memref<1x32xf32, #tpu.memory_space<vmem>>, %arg8: memref<96x32xbf16, #tpu.memory_space<vmem>>, %arg9: memref<1x32xf32, #tpu.memory_space<vmem>>, %arg10: memref<1x32xf32, #tpu.memory_space<vmem>>, %arg11: memref<96x32xbf16, #tpu.memory_space<vmem>>, %arg12: memref<1x32xf32, #tpu.memory_space<vmem>>, %arg13: memref<1x32xf32, #tpu.memory_space<vmem>>, %arg14: memref<1x32xf32, #tpu.memory_space<vmem>>, %arg15: memref<1x1xf32, #tpu.memory_space<vmem>>, %arg16: memref<8x1xf32, #tpu.memory_space<vmem>>) attributes {dimension_semantics = [#tpu.dimension_semantics<arbitrary>], iteration_bounds = array<i64: 1>, scalar_prefetch = 0 : i64, scratch_operands = 0 : i64, tpu.core_type = #tpu.core_type<tc>, window_params = [{pipeline_mode = #tpu.pipeline_mode<synchronous>, transform_indices = @transform_0, window_bounds = array<i64: 128, 1>}, {pipeline_mode = #tpu.pipeline_mode<synchronous>, transform_indices = @transform_1, window_bounds = array<i64: 3, 32>}, {pipeline_mode = #tpu.pipeline_mode<synchronous>, transform_indices = @transform_2, window_bounds = array<i64: 1, 32>}, {pipeline_mode = #tpu.pipeline_mode<synchronous>, transform_indices = @transform_3, window_bounds = array<i64: 1, 32>}, {pipeline_mode = #tpu.pipeline_mode<synchronous>, transform_indices = @transform_4, window_bounds = array<i64: 96, 32>}, {pipeline_mode = #tpu.pipeline_mode<synchronous>, transform_indices = @transform_5, window_bounds = array<i64: 1, 32>}, {pipeline_mode = #tpu.pipeline_mode<synchronous>, transform_indices = @transform_6, window_bounds = array<i64: 1, 32>}, {pipeline_mode = #tpu.pipeline_mode<synchronous>, transform_indices = @transform_7, window_bounds = array<i64: 96, 32>}, {pipeline_mode = #tpu.pipeline_mode<synchronous>, transform_indices = @transform_8, window_bounds = array<i64: 1, 32>}, {pipeline_mode = #tpu.pipeline_mode<synchronous>, transform_indices = @transform_9, window_bounds = array<i64: 1, 32>}, {pipeline_mode = #tpu.pipeline_mode<synchronous>, transform_indices = @transform_10, window_bounds = array<i64: 96, 32>}, {pipeline_mode = #tpu.pipeline_mode<synchronous>, transform_indices = @transform_11, window_bounds = array<i64: 1, 32>}, {pipeline_mode = #tpu.pipeline_mode<synchronous>, transform_indices = @transform_12, window_bounds = array<i64: 1, 32>}, {pipeline_mode = #tpu.pipeline_mode<synchronous>, transform_indices = @transform_13, window_bounds = array<i64: 1, 32>}, {pipeline_mode = #tpu.pipeline_mode<synchronous>, transform_indices = @transform_14, window_bounds = array<i64: 1, 1>}, {pipeline_mode = #tpu.pipeline_mode<synchronous>, transform_indices = @transform_15, window_bounds = array<i64: 8, 1>}]} {
    %c0 = arith.constant 0 : index
    %c0_0 = arith.constant 0 : index
    %0 = vector.load %arg1[%c0, %c0_0] : memref<128x1xf32, #tpu.memory_space<vmem>>, vector<128x1xf32>
    %1 = tpu.iota {dimensions = array<i32: 0>} : vector<64x128xi32>
    %2 = tpu.iota {dimensions = array<i32: 1>} : vector<64x128xi32>
    %c32_i32 = arith.constant 32 : i32
    %c0_i32 = arith.constant 0 : i32
    %3 = arith.cmpi eq, %c32_i32, %c0_i32 : i32
    %c1_i32 = arith.constant 1 : i32
    %4 = arith.select %3, %c1_i32, %c32_i32 : i32
    %5 = vector.broadcast %4 : i32 to vector<64x128xi32>
    %6 = arith.remsi %1, %5 : vector<64x128xi32>
    %c0_i32_1 = arith.constant 0 : i32
    %7 = vector.broadcast %c0_i32_1 : i32 to vector<64x128xi32>
    %8 = arith.cmpi ne, %6, %7 : vector<64x128xi32>
    %c0_i32_2 = arith.constant 0 : i32
    %9 = vector.broadcast %c0_i32_2 : i32 to vector<64x128xi32>
    %10 = arith.cmpi slt, %6, %9 : vector<64x128xi32>
    %c0_i32_3 = arith.constant 0 : i32
    %11 = arith.cmpi slt, %4, %c0_i32_3 : i32
    %12 = vector.broadcast %11 : i1 to vector<64x128xi1>
    %13 = vector.broadcast %12 : vector<64x128xi1> to vector<64x128xi1>
    %14 = arith.xori %10, %13 : vector<64x128xi1>
    %15 = arith.andi %14, %8 : vector<64x128xi1>
    %16 = vector.broadcast %4 : i32 to vector<64x128xi32>
    %17 = arith.addi %6, %16 : vector<64x128xi32>
    %18 = arith.select %15, %17, %6 : vector<64x128xi1>, vector<64x128xi32>
    %c0_i32_4 = arith.constant 0 : i32
    %19 = vector.broadcast %c0_i32_4 : i32 to vector<64x128xi32>
    %20 = arith.cmpi ne, %18, %19 : vector<64x128xi32>
    %c2_i32 = arith.constant 2 : i32
    %21 = vector.broadcast %c2_i32 : i32 to vector<64x128xi32>
    %22 = arith.muli %21, %1 : vector<64x128xi32>
    %c1_i32_5 = arith.constant 1 : i32
    %23 = vector.broadcast %c1_i32_5 : i32 to vector<64x128xi32>
    %24 = arith.subi %22, %23 : vector<64x128xi32>
    %25 = arith.cmpi eq, %2, %24 : vector<64x128xi32>
    %26 = arith.andi %25, %20 : vector<64x128xi1>
    %c2_i32_6 = arith.constant 2 : i32
    %27 = vector.broadcast %c2_i32_6 : i32 to vector<64x128xi32>
    %28 = arith.muli %27, %1 : vector<64x128xi32>
    %29 = arith.cmpi eq, %2, %28 : vector<64x128xi32>
    %c2_i32_7 = arith.constant 2 : i32
    %30 = vector.broadcast %c2_i32_7 : i32 to vector<64x128xi32>
    %31 = arith.muli %30, %1 : vector<64x128xi32>
    %c1_i32_8 = arith.constant 1 : i32
    %32 = vector.broadcast %c1_i32_8 : i32 to vector<64x128xi32>
    %33 = arith.addi %31, %32 : vector<64x128xi32>
    %34 = arith.cmpi eq, %2, %33 : vector<64x128xi32>
    %35 = arith.extui %26 : vector<64x128xi1> to vector<64x128xi32>
    %36 = arith.sitofp %35 : vector<64x128xi32> to vector<64x128xf32>
    %37 = arith.extui %29 : vector<64x128xi1> to vector<64x128xi32>
    %38 = arith.sitofp %37 : vector<64x128xi32> to vector<64x128xf32>
    %39 = arith.extui %34 : vector<64x128xi1> to vector<64x128xi32>
    %40 = arith.sitofp %39 : vector<64x128xi32> to vector<64x128xf32>
    %c0_9 = arith.constant 0 : index
    %c0_10 = arith.constant 0 : index
    %41 = vector.load %arg2[%c0_9, %c0_10] : memref<3x32xf32, #tpu.memory_space<vmem>>, vector<1x32xf32>
    %42 = vector.broadcast %0 : vector<128x1xf32> to vector<128x32xf32>
    %43 = vector.broadcast %41 : vector<1x32xf32> to vector<128x32xf32>
    %44 = arith.mulf %42, %43 : vector<128x32xf32>
    %c1 = arith.constant 1 : index
    %c0_11 = arith.constant 0 : index
    %45 = vector.load %arg2[%c1, %c0_11] : memref<3x32xf32, #tpu.memory_space<vmem>>, vector<1x32xf32>
    %46 = vector.broadcast %0 : vector<128x1xf32> to vector<128x32xf32>
    %47 = vector.broadcast %45 : vector<1x32xf32> to vector<128x32xf32>
    %48 = arith.mulf %46, %47 : vector<128x32xf32>
    %c2 = arith.constant 2 : index
    %c0_12 = arith.constant 0 : index
    %49 = vector.load %arg2[%c2, %c0_12] : memref<3x32xf32, #tpu.memory_space<vmem>>, vector<1x32xf32>
    %50 = vector.broadcast %0 : vector<128x1xf32> to vector<128x32xf32>
    %51 = vector.broadcast %49 : vector<1x32xf32> to vector<128x32xf32>
    %52 = arith.mulf %50, %51 : vector<128x32xf32>
    %cst = arith.constant dense<0.000000e+00> : vector<64x32xf32>
    %53 = tpu.matmul %36, %44, %cst {dimension_numbers = #tpu.dot_dimension_numbers<[1], [0], [0], [1], [0, 0, 1, 1], [], []>} : vector<64x128xf32>, vector<128x32xf32>, vector<64x32xf32> -> vector<64x32xf32>
    %cst_13 = arith.constant dense<0.000000e+00> : vector<64x32xf32>
    %54 = tpu.matmul %38, %48, %cst_13 {dimension_numbers = #tpu.dot_dimension_numbers<[1], [0], [0], [1], [0, 0, 1, 1], [], []>} : vector<64x128xf32>, vector<128x32xf32>, vector<64x32xf32> -> vector<64x32xf32>
    %55 = arith.addf %53, %54 : vector<64x32xf32>
    %cst_14 = arith.constant dense<0.000000e+00> : vector<64x32xf32>
    %56 = tpu.matmul %40, %52, %cst_14 {dimension_numbers = #tpu.dot_dimension_numbers<[1], [0], [0], [1], [0, 0, 1, 1], [], []>} : vector<64x128xf32>, vector<128x32xf32>, vector<64x32xf32> -> vector<64x32xf32>
    %57 = arith.addf %55, %56 : vector<64x32xf32>
    %cst_15 = arith.constant dense<0.000000e+00> : vector<32xf32>
    %58 = vector.multi_reduction <add>, %57, %cst_15 [0] : vector<64x32xf32> to vector<32xf32>
    %59 = vector.shape_cast %58 : vector<32xf32> to vector<1x32xf32>
    %cst_16 = arith.constant 1.562500e-02 : f32
    %60 = vector.broadcast %cst_16 : f32 to vector<1x32xf32>
    %61 = arith.mulf %59, %60 : vector<1x32xf32>
    %62 = vector.broadcast %61 : vector<1x32xf32> to vector<64x32xf32>
    %63 = arith.subf %57, %62 : vector<64x32xf32>
    %64 = arith.mulf %63, %63 : vector<64x32xf32>
    %cst_17 = arith.constant dense<0.000000e+00> : vector<32xf32>
    %65 = vector.multi_reduction <add>, %64, %cst_17 [0] : vector<64x32xf32> to vector<32xf32>
    %66 = vector.shape_cast %65 : vector<32xf32> to vector<1x32xf32>
    %cst_18 = arith.constant 1.562500e-02 : f32
    %67 = vector.broadcast %cst_18 : f32 to vector<1x32xf32>
    %68 = arith.mulf %66, %67 : vector<1x32xf32>
    %c0_19 = arith.constant 0 : index
    %c0_20 = arith.constant 0 : index
    %69 = vector.load %arg3[%c0_19, %c0_20] : memref<1x32xf32, #tpu.memory_space<vmem>>, vector<1x32xf32>
    %cst_21 = arith.constant 9.99999974E-6 : f32
    %70 = vector.broadcast %cst_21 : f32 to vector<1x32xf32>
    %71 = arith.addf %68, %70 : vector<1x32xf32>
    %72 = math.rsqrt %71 : vector<1x32xf32>
    %73 = arith.mulf %69, %72 : vector<1x32xf32>
    %c0_22 = arith.constant 0 : index
    %c0_23 = arith.constant 0 : index
    %74 = vector.load %arg4[%c0_22, %c0_23] : memref<1x32xf32, #tpu.memory_space<vmem>>, vector<1x32xf32>
    %75 = arith.mulf %61, %73 : vector<1x32xf32>
    %76 = arith.subf %74, %75 : vector<1x32xf32>
    %77 = vector.broadcast %73 : vector<1x32xf32> to vector<64x32xf32>
    %78 = arith.mulf %57, %77 : vector<64x32xf32>
    %79 = vector.broadcast %76 : vector<1x32xf32> to vector<64x32xf32>
    %80 = arith.addf %78, %79 : vector<64x32xf32>
    %cst_24 = arith.constant 0.000000e+00 : f32
    %81 = vector.broadcast %cst_24 : f32 to vector<64x32xf32>
    %82 = arith.maximumf %80, %81 : vector<64x32xf32>
    %83 = tpu.iota {dimensions = array<i32: 0>} : vector<32x64xi32>
    %84 = tpu.iota {dimensions = array<i32: 1>} : vector<32x64xi32>
    %c16_i32 = arith.constant 16 : i32
    %c0_i32_25 = arith.constant 0 : i32
    %85 = arith.cmpi eq, %c16_i32, %c0_i32_25 : i32
    %c1_i32_26 = arith.constant 1 : i32
    %86 = arith.select %85, %c1_i32_26, %c16_i32 : i32
    %87 = vector.broadcast %86 : i32 to vector<32x64xi32>
    %88 = arith.remsi %83, %87 : vector<32x64xi32>
    %c0_i32_27 = arith.constant 0 : i32
    %89 = vector.broadcast %c0_i32_27 : i32 to vector<32x64xi32>
    %90 = arith.cmpi ne, %88, %89 : vector<32x64xi32>
    %c0_i32_28 = arith.constant 0 : i32
    %91 = vector.broadcast %c0_i32_28 : i32 to vector<32x64xi32>
    %92 = arith.cmpi slt, %88, %91 : vector<32x64xi32>
    %c0_i32_29 = arith.constant 0 : i32
    %93 = arith.cmpi slt, %86, %c0_i32_29 : i32
    %94 = vector.broadcast %93 : i1 to vector<32x64xi1>
    %95 = vector.broadcast %94 : vector<32x64xi1> to vector<32x64xi1>
    %96 = arith.xori %92, %95 : vector<32x64xi1>
    %97 = arith.andi %96, %90 : vector<32x64xi1>
    %98 = vector.broadcast %86 : i32 to vector<32x64xi32>
    %99 = arith.addi %88, %98 : vector<32x64xi32>
    %100 = arith.select %97, %99, %88 : vector<32x64xi1>, vector<32x64xi32>
    %c0_i32_30 = arith.constant 0 : i32
    %101 = vector.broadcast %c0_i32_30 : i32 to vector<32x64xi32>
    %102 = arith.cmpi ne, %100, %101 : vector<32x64xi32>
    %c2_i32_31 = arith.constant 2 : i32
    %103 = vector.broadcast %c2_i32_31 : i32 to vector<32x64xi32>
    %104 = arith.muli %103, %83 : vector<32x64xi32>
    %c1_i32_32 = arith.constant 1 : i32
    %105 = vector.broadcast %c1_i32_32 : i32 to vector<32x64xi32>
    %106 = arith.subi %104, %105 : vector<32x64xi32>
    %107 = arith.cmpi eq, %84, %106 : vector<32x64xi32>
    %108 = arith.andi %107, %102 : vector<32x64xi1>
    %c2_i32_33 = arith.constant 2 : i32
    %109 = vector.broadcast %c2_i32_33 : i32 to vector<32x64xi32>
    %110 = arith.muli %109, %83 : vector<32x64xi32>
    %111 = arith.cmpi eq, %84, %110 : vector<32x64xi32>
    %c2_i32_34 = arith.constant 2 : i32
    %112 = vector.broadcast %c2_i32_34 : i32 to vector<32x64xi32>
    %113 = arith.muli %112, %83 : vector<32x64xi32>
    %c1_i32_35 = arith.constant 1 : i32
    %114 = vector.broadcast %c1_i32_35 : i32 to vector<32x64xi32>
    %115 = arith.addi %113, %114 : vector<32x64xi32>
    %116 = arith.cmpi eq, %84, %115 : vector<32x64xi32>
    %117 = arith.extui %108 : vector<32x64xi1> to vector<32x64xi32>
    %118 = arith.sitofp %117 : vector<32x64xi32> to vector<32x64xf32>
    %119 = arith.truncf %118 : vector<32x64xf32> to vector<32x64xbf16>
    %120 = arith.extui %111 : vector<32x64xi1> to vector<32x64xi32>
    %121 = arith.sitofp %120 : vector<32x64xi32> to vector<32x64xf32>
    %122 = arith.truncf %121 : vector<32x64xf32> to vector<32x64xbf16>
    %123 = arith.extui %116 : vector<32x64xi1> to vector<32x64xi32>
    %124 = arith.sitofp %123 : vector<32x64xi32> to vector<32x64xf32>
    %125 = arith.truncf %124 : vector<32x64xf32> to vector<32x64xbf16>
    %126 = arith.truncf %82 : vector<64x32xf32> to vector<64x32xbf16>
    %cst_36 = arith.constant dense<0.000000e+00> : vector<32x32xf32>
    %127 = tpu.matmul %119, %126, %cst_36 {dimension_numbers = #tpu.dot_dimension_numbers<[1], [0], [0], [1], [0, 0, 1, 1], [], []>} : vector<32x64xbf16>, vector<64x32xbf16>, vector<32x32xf32> -> vector<32x32xf32>
    %128 = arith.truncf %127 : vector<32x32xf32> to vector<32x32xbf16>
    %cst_37 = arith.constant dense<0.000000e+00> : vector<32x32xf32>
    %129 = tpu.matmul %122, %126, %cst_37 {dimension_numbers = #tpu.dot_dimension_numbers<[1], [0], [0], [1], [0, 0, 1, 1], [], []>} : vector<32x64xbf16>, vector<64x32xbf16>, vector<32x32xf32> -> vector<32x32xf32>
    %130 = arith.truncf %129 : vector<32x32xf32> to vector<32x32xbf16>
    %cst_38 = arith.constant dense<0.000000e+00> : vector<32x32xf32>
    %131 = tpu.matmul %125, %126, %cst_38 {dimension_numbers = #tpu.dot_dimension_numbers<[1], [0], [0], [1], [0, 0, 1, 1], [], []>} : vector<32x64xbf16>, vector<64x32xbf16>, vector<32x32xf32> -> vector<32x32xf32>
    %132 = arith.truncf %131 : vector<32x32xf32> to vector<32x32xbf16>
    %c0_39 = arith.constant 0 : index
    %c0_40 = arith.constant 0 : index
    %133 = vector.load %arg5[%c0_39, %c0_40] : memref<96x32xbf16, #tpu.memory_space<vmem>>, vector<32x32xbf16>
    %cst_41 = arith.constant dense<0.000000e+00> : vector<32x32xf32>
    %134 = tpu.matmul %128, %133, %cst_41 {dimension_numbers = #tpu.dot_dimension_numbers<[1], [0], [0], [1], [0, 0, 1, 1], [], []>} : vector<32x32xbf16>, vector<32x32xbf16>, vector<32x32xf32> -> vector<32x32xf32>
    %c32 = arith.constant 32 : index
    %c0_42 = arith.constant 0 : index
    %135 = vector.load %arg5[%c32, %c0_42] : memref<96x32xbf16, #tpu.memory_space<vmem>>, vector<32x32xbf16>
    %cst_43 = arith.constant dense<0.000000e+00> : vector<32x32xf32>
    %136 = tpu.matmul %130, %135, %cst_43 {dimension_numbers = #tpu.dot_dimension_numbers<[1], [0], [0], [1], [0, 0, 1, 1], [], []>} : vector<32x32xbf16>, vector<32x32xbf16>, vector<32x32xf32> -> vector<32x32xf32>
    %137 = arith.addf %134, %136 : vector<32x32xf32>
    %c64 = arith.constant 64 : index
    %c0_44 = arith.constant 0 : index
    %138 = vector.load %arg5[%c64, %c0_44] : memref<96x32xbf16, #tpu.memory_space<vmem>>, vector<32x32xbf16>
    %cst_45 = arith.constant dense<0.000000e+00> : vector<32x32xf32>
    %139 = tpu.matmul %132, %138, %cst_45 {dimension_numbers = #tpu.dot_dimension_numbers<[1], [0], [0], [1], [0, 0, 1, 1], [], []>} : vector<32x32xbf16>, vector<32x32xbf16>, vector<32x32xf32> -> vector<32x32xf32>
    %140 = arith.addf %137, %139 : vector<32x32xf32>
    %cst_46 = arith.constant dense<0.000000e+00> : vector<32xf32>
    %141 = vector.multi_reduction <add>, %140, %cst_46 [0] : vector<32x32xf32> to vector<32xf32>
    %142 = vector.shape_cast %141 : vector<32xf32> to vector<1x32xf32>
    %cst_47 = arith.constant 3.125000e-02 : f32
    %143 = vector.broadcast %cst_47 : f32 to vector<1x32xf32>
    %144 = arith.mulf %142, %143 : vector<1x32xf32>
    %145 = vector.broadcast %144 : vector<1x32xf32> to vector<32x32xf32>
    %146 = arith.subf %140, %145 : vector<32x32xf32>
    %147 = arith.mulf %146, %146 : vector<32x32xf32>
    %cst_48 = arith.constant dense<0.000000e+00> : vector<32xf32>
    %148 = vector.multi_reduction <add>, %147, %cst_48 [0] : vector<32x32xf32> to vector<32xf32>
    %149 = vector.shape_cast %148 : vector<32xf32> to vector<1x32xf32>
    %cst_49 = arith.constant 3.125000e-02 : f32
    %150 = vector.broadcast %cst_49 : f32 to vector<1x32xf32>
    %151 = arith.mulf %149, %150 : vector<1x32xf32>
    %c0_50 = arith.constant 0 : index
    %c0_51 = arith.constant 0 : index
    %152 = vector.load %arg6[%c0_50, %c0_51] : memref<1x32xf32, #tpu.memory_space<vmem>>, vector<1x32xf32>
    %cst_52 = arith.constant 9.99999974E-6 : f32
    %153 = vector.broadcast %cst_52 : f32 to vector<1x32xf32>
    %154 = arith.addf %151, %153 : vector<1x32xf32>
    %155 = math.rsqrt %154 : vector<1x32xf32>
    %156 = arith.mulf %152, %155 : vector<1x32xf32>
    %c0_53 = arith.constant 0 : index
    %c0_54 = arith.constant 0 : index
    %157 = vector.load %arg7[%c0_53, %c0_54] : memref<1x32xf32, #tpu.memory_space<vmem>>, vector<1x32xf32>
    %158 = arith.mulf %144, %156 : vector<1x32xf32>
    %159 = arith.subf %157, %158 : vector<1x32xf32>
    %160 = vector.broadcast %156 : vector<1x32xf32> to vector<32x32xf32>
    %161 = arith.mulf %140, %160 : vector<32x32xf32>
    %162 = vector.broadcast %159 : vector<1x32xf32> to vector<32x32xf32>
    %163 = arith.addf %161, %162 : vector<32x32xf32>
    %cst_55 = arith.constant 0.000000e+00 : f32
    %164 = vector.broadcast %cst_55 : f32 to vector<32x32xf32>
    %165 = arith.maximumf %163, %164 : vector<32x32xf32>
    %166 = tpu.iota {dimensions = array<i32: 0>} : vector<16x32xi32>
    %167 = tpu.iota {dimensions = array<i32: 1>} : vector<16x32xi32>
    %c8_i32 = arith.constant 8 : i32
    %c0_i32_56 = arith.constant 0 : i32
    %168 = arith.cmpi eq, %c8_i32, %c0_i32_56 : i32
    %c1_i32_57 = arith.constant 1 : i32
    %169 = arith.select %168, %c1_i32_57, %c8_i32 : i32
    %170 = vector.broadcast %169 : i32 to vector<16x32xi32>
    %171 = arith.remsi %166, %170 : vector<16x32xi32>
    %c0_i32_58 = arith.constant 0 : i32
    %172 = vector.broadcast %c0_i32_58 : i32 to vector<16x32xi32>
    %173 = arith.cmpi ne, %171, %172 : vector<16x32xi32>
    %c0_i32_59 = arith.constant 0 : i32
    %174 = vector.broadcast %c0_i32_59 : i32 to vector<16x32xi32>
    %175 = arith.cmpi slt, %171, %174 : vector<16x32xi32>
    %c0_i32_60 = arith.constant 0 : i32
    %176 = arith.cmpi slt, %169, %c0_i32_60 : i32
    %177 = vector.broadcast %176 : i1 to vector<16x32xi1>
    %178 = vector.broadcast %177 : vector<16x32xi1> to vector<16x32xi1>
    %179 = arith.xori %175, %178 : vector<16x32xi1>
    %180 = arith.andi %179, %173 : vector<16x32xi1>
    %181 = vector.broadcast %169 : i32 to vector<16x32xi32>
    %182 = arith.addi %171, %181 : vector<16x32xi32>
    %183 = arith.select %180, %182, %171 : vector<16x32xi1>, vector<16x32xi32>
    %c0_i32_61 = arith.constant 0 : i32
    %184 = vector.broadcast %c0_i32_61 : i32 to vector<16x32xi32>
    %185 = arith.cmpi ne, %183, %184 : vector<16x32xi32>
    %c2_i32_62 = arith.constant 2 : i32
    %186 = vector.broadcast %c2_i32_62 : i32 to vector<16x32xi32>
    %187 = arith.muli %186, %166 : vector<16x32xi32>
    %c1_i32_63 = arith.constant 1 : i32
    %188 = vector.broadcast %c1_i32_63 : i32 to vector<16x32xi32>
    %189 = arith.subi %187, %188 : vector<16x32xi32>
    %190 = arith.cmpi eq, %167, %189 : vector<16x32xi32>
    %191 = arith.andi %190, %185 : vector<16x32xi1>
    %c2_i32_64 = arith.constant 2 : i32
    %192 = vector.broadcast %c2_i32_64 : i32 to vector<16x32xi32>
    %193 = arith.muli %192, %166 : vector<16x32xi32>
    %194 = arith.cmpi eq, %167, %193 : vector<16x32xi32>
    %c2_i32_65 = arith.constant 2 : i32
    %195 = vector.broadcast %c2_i32_65 : i32 to vector<16x32xi32>
    %196 = arith.muli %195, %166 : vector<16x32xi32>
    %c1_i32_66 = arith.constant 1 : i32
    %197 = vector.broadcast %c1_i32_66 : i32 to vector<16x32xi32>
    %198 = arith.addi %196, %197 : vector<16x32xi32>
    %199 = arith.cmpi eq, %167, %198 : vector<16x32xi32>
    %200 = arith.extui %191 : vector<16x32xi1> to vector<16x32xi32>
    %201 = arith.sitofp %200 : vector<16x32xi32> to vector<16x32xf32>
    %202 = arith.truncf %201 : vector<16x32xf32> to vector<16x32xbf16>
    %203 = arith.extui %194 : vector<16x32xi1> to vector<16x32xi32>
    %204 = arith.sitofp %203 : vector<16x32xi32> to vector<16x32xf32>
    %205 = arith.truncf %204 : vector<16x32xf32> to vector<16x32xbf16>
    %206 = arith.extui %199 : vector<16x32xi1> to vector<16x32xi32>
    %207 = arith.sitofp %206 : vector<16x32xi32> to vector<16x32xf32>
    %208 = arith.truncf %207 : vector<16x32xf32> to vector<16x32xbf16>
    %209 = arith.truncf %165 : vector<32x32xf32> to vector<32x32xbf16>
    %cst_67 = arith.constant dense<0.000000e+00> : vector<16x32xf32>
    %210 = tpu.matmul %202, %209, %cst_67 {dimension_numbers = #tpu.dot_dimension_numbers<[1], [0], [0], [1], [0, 0, 1, 1], [], []>} : vector<16x32xbf16>, vector<32x32xbf16>, vector<16x32xf32> -> vector<16x32xf32>
    %211 = arith.truncf %210 : vector<16x32xf32> to vector<16x32xbf16>
    %cst_68 = arith.constant dense<0.000000e+00> : vector<16x32xf32>
    %212 = tpu.matmul %205, %209, %cst_68 {dimension_numbers = #tpu.dot_dimension_numbers<[1], [0], [0], [1], [0, 0, 1, 1], [], []>} : vector<16x32xbf16>, vector<32x32xbf16>, vector<16x32xf32> -> vector<16x32xf32>
    %213 = arith.truncf %212 : vector<16x32xf32> to vector<16x32xbf16>
    %cst_69 = arith.constant dense<0.000000e+00> : vector<16x32xf32>
    %214 = tpu.matmul %208, %209, %cst_69 {dimension_numbers = #tpu.dot_dimension_numbers<[1], [0], [0], [1], [0, 0, 1, 1], [], []>} : vector<16x32xbf16>, vector<32x32xbf16>, vector<16x32xf32> -> vector<16x32xf32>
    %215 = arith.truncf %214 : vector<16x32xf32> to vector<16x32xbf16>
    %c0_70 = arith.constant 0 : index
    %c0_71 = arith.constant 0 : index
    %216 = vector.load %arg8[%c0_70, %c0_71] : memref<96x32xbf16, #tpu.memory_space<vmem>>, vector<32x32xbf16>
    %cst_72 = arith.constant dense<0.000000e+00> : vector<16x32xf32>
    %217 = tpu.matmul %211, %216, %cst_72 {dimension_numbers = #tpu.dot_dimension_numbers<[1], [0], [0], [1], [0, 0, 1, 1], [], []>} : vector<16x32xbf16>, vector<32x32xbf16>, vector<16x32xf32> -> vector<16x32xf32>
    %c32_73 = arith.constant 32 : index
    %c0_74 = arith.constant 0 : index
    %218 = vector.load %arg8[%c32_73, %c0_74] : memref<96x32xbf16, #tpu.memory_space<vmem>>, vector<32x32xbf16>
    %cst_75 = arith.constant dense<0.000000e+00> : vector<16x32xf32>
    %219 = tpu.matmul %213, %218, %cst_75 {dimension_numbers = #tpu.dot_dimension_numbers<[1], [0], [0], [1], [0, 0, 1, 1], [], []>} : vector<16x32xbf16>, vector<32x32xbf16>, vector<16x32xf32> -> vector<16x32xf32>
    %220 = arith.addf %217, %219 : vector<16x32xf32>
    %c64_76 = arith.constant 64 : index
    %c0_77 = arith.constant 0 : index
    %221 = vector.load %arg8[%c64_76, %c0_77] : memref<96x32xbf16, #tpu.memory_space<vmem>>, vector<32x32xbf16>
    %cst_78 = arith.constant dense<0.000000e+00> : vector<16x32xf32>
    %222 = tpu.matmul %215, %221, %cst_78 {dimension_numbers = #tpu.dot_dimension_numbers<[1], [0], [0], [1], [0, 0, 1, 1], [], []>} : vector<16x32xbf16>, vector<32x32xbf16>, vector<16x32xf32> -> vector<16x32xf32>
    %223 = arith.addf %220, %222 : vector<16x32xf32>
    %cst_79 = arith.constant dense<0.000000e+00> : vector<32xf32>
    %224 = vector.multi_reduction <add>, %223, %cst_79 [0] : vector<16x32xf32> to vector<32xf32>
    %225 = vector.shape_cast %224 : vector<32xf32> to vector<1x32xf32>
    %cst_80 = arith.constant 6.250000e-02 : f32
    %226 = vector.broadcast %cst_80 : f32 to vector<1x32xf32>
    %227 = arith.mulf %225, %226 : vector<1x32xf32>
    %228 = vector.broadcast %227 : vector<1x32xf32> to vector<16x32xf32>
    %229 = arith.subf %223, %228 : vector<16x32xf32>
    %230 = arith.mulf %229, %229 : vector<16x32xf32>
    %cst_81 = arith.constant dense<0.000000e+00> : vector<32xf32>
    %231 = vector.multi_reduction <add>, %230, %cst_81 [0] : vector<16x32xf32> to vector<32xf32>
    %232 = vector.shape_cast %231 : vector<32xf32> to vector<1x32xf32>
    %cst_82 = arith.constant 6.250000e-02 : f32
    %233 = vector.broadcast %cst_82 : f32 to vector<1x32xf32>
    %234 = arith.mulf %232, %233 : vector<1x32xf32>
    %c0_83 = arith.constant 0 : index
    %c0_84 = arith.constant 0 : index
    %235 = vector.load %arg9[%c0_83, %c0_84] : memref<1x32xf32, #tpu.memory_space<vmem>>, vector<1x32xf32>
    %cst_85 = arith.constant 9.99999974E-6 : f32
    %236 = vector.broadcast %cst_85 : f32 to vector<1x32xf32>
    %237 = arith.addf %234, %236 : vector<1x32xf32>
    %238 = math.rsqrt %237 : vector<1x32xf32>
    %239 = arith.mulf %235, %238 : vector<1x32xf32>
    %c0_86 = arith.constant 0 : index
    %c0_87 = arith.constant 0 : index
    %240 = vector.load %arg10[%c0_86, %c0_87] : memref<1x32xf32, #tpu.memory_space<vmem>>, vector<1x32xf32>
    %241 = arith.mulf %227, %239 : vector<1x32xf32>
    %242 = arith.subf %240, %241 : vector<1x32xf32>
    %243 = vector.broadcast %239 : vector<1x32xf32> to vector<16x32xf32>
    %244 = arith.mulf %223, %243 : vector<16x32xf32>
    %245 = vector.broadcast %242 : vector<1x32xf32> to vector<16x32xf32>
    %246 = arith.addf %244, %245 : vector<16x32xf32>
    %cst_88 = arith.constant 0.000000e+00 : f32
    %247 = vector.broadcast %cst_88 : f32 to vector<16x32xf32>
    %248 = arith.maximumf %246, %247 : vector<16x32xf32>
    %249 = tpu.iota {dimensions = array<i32: 0>} : vector<8x16xi32>
    %250 = tpu.iota {dimensions = array<i32: 1>} : vector<8x16xi32>
    %c4_i32 = arith.constant 4 : i32
    %c0_i32_89 = arith.constant 0 : i32
    %251 = arith.cmpi eq, %c4_i32, %c0_i32_89 : i32
    %c1_i32_90 = arith.constant 1 : i32
    %252 = arith.select %251, %c1_i32_90, %c4_i32 : i32
    %253 = vector.broadcast %252 : i32 to vector<8x16xi32>
    %254 = arith.remsi %249, %253 : vector<8x16xi32>
    %c0_i32_91 = arith.constant 0 : i32
    %255 = vector.broadcast %c0_i32_91 : i32 to vector<8x16xi32>
    %256 = arith.cmpi ne, %254, %255 : vector<8x16xi32>
    %c0_i32_92 = arith.constant 0 : i32
    %257 = vector.broadcast %c0_i32_92 : i32 to vector<8x16xi32>
    %258 = arith.cmpi slt, %254, %257 : vector<8x16xi32>
    %c0_i32_93 = arith.constant 0 : i32
    %259 = arith.cmpi slt, %252, %c0_i32_93 : i32
    %260 = vector.broadcast %259 : i1 to vector<8x16xi1>
    %261 = vector.broadcast %260 : vector<8x16xi1> to vector<8x16xi1>
    %262 = arith.xori %258, %261 : vector<8x16xi1>
    %263 = arith.andi %262, %256 : vector<8x16xi1>
    %264 = vector.broadcast %252 : i32 to vector<8x16xi32>
    %265 = arith.addi %254, %264 : vector<8x16xi32>
    %266 = arith.select %263, %265, %254 : vector<8x16xi1>, vector<8x16xi32>
    %c0_i32_94 = arith.constant 0 : i32
    %267 = vector.broadcast %c0_i32_94 : i32 to vector<8x16xi32>
    %268 = arith.cmpi ne, %266, %267 : vector<8x16xi32>
    %c2_i32_95 = arith.constant 2 : i32
    %269 = vector.broadcast %c2_i32_95 : i32 to vector<8x16xi32>
    %270 = arith.muli %269, %249 : vector<8x16xi32>
    %c1_i32_96 = arith.constant 1 : i32
    %271 = vector.broadcast %c1_i32_96 : i32 to vector<8x16xi32>
    %272 = arith.subi %270, %271 : vector<8x16xi32>
    %273 = arith.cmpi eq, %250, %272 : vector<8x16xi32>
    %274 = arith.andi %273, %268 : vector<8x16xi1>
    %c2_i32_97 = arith.constant 2 : i32
    %275 = vector.broadcast %c2_i32_97 : i32 to vector<8x16xi32>
    %276 = arith.muli %275, %249 : vector<8x16xi32>
    %277 = arith.cmpi eq, %250, %276 : vector<8x16xi32>
    %c2_i32_98 = arith.constant 2 : i32
    %278 = vector.broadcast %c2_i32_98 : i32 to vector<8x16xi32>
    %279 = arith.muli %278, %249 : vector<8x16xi32>
    %c1_i32_99 = arith.constant 1 : i32
    %280 = vector.broadcast %c1_i32_99 : i32 to vector<8x16xi32>
    %281 = arith.addi %279, %280 : vector<8x16xi32>
    %282 = arith.cmpi eq, %250, %281 : vector<8x16xi32>
    %283 = arith.extui %274 : vector<8x16xi1> to vector<8x16xi32>
    %284 = arith.sitofp %283 : vector<8x16xi32> to vector<8x16xf32>
    %285 = arith.truncf %284 : vector<8x16xf32> to vector<8x16xbf16>
    %286 = arith.extui %277 : vector<8x16xi1> to vector<8x16xi32>
    %287 = arith.sitofp %286 : vector<8x16xi32> to vector<8x16xf32>
    %288 = arith.truncf %287 : vector<8x16xf32> to vector<8x16xbf16>
    %289 = arith.extui %282 : vector<8x16xi1> to vector<8x16xi32>
    %290 = arith.sitofp %289 : vector<8x16xi32> to vector<8x16xf32>
    %291 = arith.truncf %290 : vector<8x16xf32> to vector<8x16xbf16>
    %292 = arith.truncf %248 : vector<16x32xf32> to vector<16x32xbf16>
    %cst_100 = arith.constant dense<0.000000e+00> : vector<8x32xf32>
    %293 = tpu.matmul %285, %292, %cst_100 {dimension_numbers = #tpu.dot_dimension_numbers<[1], [0], [0], [1], [0, 0, 1, 1], [], []>} : vector<8x16xbf16>, vector<16x32xbf16>, vector<8x32xf32> -> vector<8x32xf32>
    %294 = arith.truncf %293 : vector<8x32xf32> to vector<8x32xbf16>
    %cst_101 = arith.constant dense<0.000000e+00> : vector<8x32xf32>
    %295 = tpu.matmul %288, %292, %cst_101 {dimension_numbers = #tpu.dot_dimension_numbers<[1], [0], [0], [1], [0, 0, 1, 1], [], []>} : vector<8x16xbf16>, vector<16x32xbf16>, vector<8x32xf32> -> vector<8x32xf32>
    %296 = arith.truncf %295 : vector<8x32xf32> to vector<8x32xbf16>
    %cst_102 = arith.constant dense<0.000000e+00> : vector<8x32xf32>
    %297 = tpu.matmul %291, %292, %cst_102 {dimension_numbers = #tpu.dot_dimension_numbers<[1], [0], [0], [1], [0, 0, 1, 1], [], []>} : vector<8x16xbf16>, vector<16x32xbf16>, vector<8x32xf32> -> vector<8x32xf32>
    %298 = arith.truncf %297 : vector<8x32xf32> to vector<8x32xbf16>
    %c0_103 = arith.constant 0 : index
    %c0_104 = arith.constant 0 : index
    %299 = vector.load %arg11[%c0_103, %c0_104] : memref<96x32xbf16, #tpu.memory_space<vmem>>, vector<32x32xbf16>
    %cst_105 = arith.constant dense<0.000000e+00> : vector<8x32xf32>
    %300 = tpu.matmul %294, %299, %cst_105 {dimension_numbers = #tpu.dot_dimension_numbers<[1], [0], [0], [1], [0, 0, 1, 1], [], []>} : vector<8x32xbf16>, vector<32x32xbf16>, vector<8x32xf32> -> vector<8x32xf32>
    %c32_106 = arith.constant 32 : index
    %c0_107 = arith.constant 0 : index
    %301 = vector.load %arg11[%c32_106, %c0_107] : memref<96x32xbf16, #tpu.memory_space<vmem>>, vector<32x32xbf16>
    %cst_108 = arith.constant dense<0.000000e+00> : vector<8x32xf32>
    %302 = tpu.matmul %296, %301, %cst_108 {dimension_numbers = #tpu.dot_dimension_numbers<[1], [0], [0], [1], [0, 0, 1, 1], [], []>} : vector<8x32xbf16>, vector<32x32xbf16>, vector<8x32xf32> -> vector<8x32xf32>
    %303 = arith.addf %300, %302 : vector<8x32xf32>
    %c64_109 = arith.constant 64 : index
    %c0_110 = arith.constant 0 : index
    %304 = vector.load %arg11[%c64_109, %c0_110] : memref<96x32xbf16, #tpu.memory_space<vmem>>, vector<32x32xbf16>
    %cst_111 = arith.constant dense<0.000000e+00> : vector<8x32xf32>
    %305 = tpu.matmul %298, %304, %cst_111 {dimension_numbers = #tpu.dot_dimension_numbers<[1], [0], [0], [1], [0, 0, 1, 1], [], []>} : vector<8x32xbf16>, vector<32x32xbf16>, vector<8x32xf32> -> vector<8x32xf32>
    %306 = arith.addf %303, %305 : vector<8x32xf32>
    %cst_112 = arith.constant dense<0.000000e+00> : vector<32xf32>
    %307 = vector.multi_reduction <add>, %306, %cst_112 [0] : vector<8x32xf32> to vector<32xf32>
    %308 = vector.shape_cast %307 : vector<32xf32> to vector<1x32xf32>
    %cst_113 = arith.constant 1.250000e-01 : f32
    %309 = vector.broadcast %cst_113 : f32 to vector<1x32xf32>
    %310 = arith.mulf %308, %309 : vector<1x32xf32>
    %311 = vector.broadcast %310 : vector<1x32xf32> to vector<8x32xf32>
    %312 = arith.subf %306, %311 : vector<8x32xf32>
    %313 = arith.mulf %312, %312 : vector<8x32xf32>
    %cst_114 = arith.constant dense<0.000000e+00> : vector<32xf32>
    %314 = vector.multi_reduction <add>, %313, %cst_114 [0] : vector<8x32xf32> to vector<32xf32>
    %315 = vector.shape_cast %314 : vector<32xf32> to vector<1x32xf32>
    %cst_115 = arith.constant 1.250000e-01 : f32
    %316 = vector.broadcast %cst_115 : f32 to vector<1x32xf32>
    %317 = arith.mulf %315, %316 : vector<1x32xf32>
    %c0_116 = arith.constant 0 : index
    %c0_117 = arith.constant 0 : index
    %318 = vector.load %arg12[%c0_116, %c0_117] : memref<1x32xf32, #tpu.memory_space<vmem>>, vector<1x32xf32>
    %cst_118 = arith.constant 9.99999974E-6 : f32
    %319 = vector.broadcast %cst_118 : f32 to vector<1x32xf32>
    %320 = arith.addf %317, %319 : vector<1x32xf32>
    %321 = math.rsqrt %320 : vector<1x32xf32>
    %322 = arith.mulf %318, %321 : vector<1x32xf32>
    %c0_119 = arith.constant 0 : index
    %c0_120 = arith.constant 0 : index
    %323 = vector.load %arg13[%c0_119, %c0_120] : memref<1x32xf32, #tpu.memory_space<vmem>>, vector<1x32xf32>
    %324 = arith.mulf %310, %322 : vector<1x32xf32>
    %325 = arith.subf %323, %324 : vector<1x32xf32>
    %326 = vector.broadcast %322 : vector<1x32xf32> to vector<8x32xf32>
    %327 = arith.mulf %306, %326 : vector<8x32xf32>
    %328 = vector.broadcast %325 : vector<1x32xf32> to vector<8x32xf32>
    %329 = arith.addf %327, %328 : vector<8x32xf32>
    %cst_121 = arith.constant 0.000000e+00 : f32
    %330 = vector.broadcast %cst_121 : f32 to vector<8x32xf32>
    %331 = arith.maximumf %329, %330 : vector<8x32xf32>
    %c0_122 = arith.constant 0 : index
    %c0_123 = arith.constant 0 : index
    %332 = vector.load %arg14[%c0_122, %c0_123] : memref<1x32xf32, #tpu.memory_space<vmem>>, vector<1x32xf32>
    %333 = vector.broadcast %332 : vector<1x32xf32> to vector<8x32xf32>
    %334 = arith.mulf %331, %333 : vector<8x32xf32>
    %cst_124 = arith.constant dense<0.000000e+00> : vector<8xf32>
    %335 = vector.multi_reduction <add>, %334, %cst_124 [1] : vector<8x32xf32> to vector<8xf32>
    %336 = vector.shape_cast %335 : vector<8xf32> to vector<8x1xf32>
    %c0_125 = arith.constant 0 : index
    %c0_126 = arith.constant 0 : index
    %337 = vector.load %arg15[%c0_125, %c0_126] : memref<1x1xf32, #tpu.memory_space<vmem>>, vector<1x1xf32>
    %338 = vector.broadcast %337 : vector<1x1xf32> to vector<8x1xf32>
    %339 = arith.addf %336, %338 : vector<8x1xf32>
    %c0_127 = arith.constant 0 : index
    %c0_128 = arith.constant 0 : index
    %340 = vector.load %arg16[%c0_127, %c0_128] : memref<8x1xf32, #tpu.memory_space<vmem>>, vector<8x1xf32>
    tpu.vector_store %arg16[%c0_127, %c0_128], %339 {strides = array<i32>} : memref<8x1xf32, #tpu.memory_space<vmem>>, vector<8x1xf32>,
    return
  }
  func.func @transform_0(%arg0: i32) -> (i32, i32) {
    %c0_i32 = arith.constant 0 : i32
    %c0_i32_0 = arith.constant 0 : i32
    %c0_i32_1 = arith.constant 0 : i32
    return %c0_i32, %c0_i32_0 : i32, i32
  }
  func.func @transform_1(%arg0: i32) -> (i32, i32) {
    %c0_i32 = arith.constant 0 : i32
    %c0_i32_0 = arith.constant 0 : i32
    %c0_i32_1 = arith.constant 0 : i32
    return %c0_i32, %c0_i32_0 : i32, i32
  }
  func.func @transform_2(%arg0: i32) -> (i32, i32) {
    %c0_i32 = arith.constant 0 : i32
    %c0_i32_0 = arith.constant 0 : i32
    %c0_i32_1 = arith.constant 0 : i32
    return %c0_i32, %c0_i32_0 : i32, i32
  }
  func.func @transform_3(%arg0: i32) -> (i32, i32) {
    %c0_i32 = arith.constant 0 : i32
    %c0_i32_0 = arith.constant 0 : i32
    %c0_i32_1 = arith.constant 0 : i32
    return %c0_i32, %c0_i32_0 : i32, i32
  }
  func.func @transform_4(%arg0: i32) -> (i32, i32) {
    %c0_i32 = arith.constant 0 : i32
    %c0_i32_0 = arith.constant 0 : i32
    %c0_i32_1 = arith.constant 0 : i32
    return %c0_i32, %c0_i32_0 : i32, i32
  }
  func.func @transform_5(%arg0: i32) -> (i32, i32) {
    %c0_i32 = arith.constant 0 : i32
    %c0_i32_0 = arith.constant 0 : i32
    %c0_i32_1 = arith.constant 0 : i32
    return %c0_i32, %c0_i32_0 : i32, i32
  }
  func.func @transform_6(%arg0: i32) -> (i32, i32) {
    %c0_i32 = arith.constant 0 : i32
    %c0_i32_0 = arith.constant 0 : i32
    %c0_i32_1 = arith.constant 0 : i32
    return %c0_i32, %c0_i32_0 : i32, i32
  }
  func.func @transform_7(%arg0: i32) -> (i32, i32) {
    %c0_i32 = arith.constant 0 : i32
    %c0_i32_0 = arith.constant 0 : i32
    %c0_i32_1 = arith.constant 0 : i32
    return %c0_i32, %c0_i32_0 : i32, i32
  }
  func.func @transform_8(%arg0: i32) -> (i32, i32) {
    %c0_i32 = arith.constant 0 : i32
    %c0_i32_0 = arith.constant 0 : i32
    %c0_i32_1 = arith.constant 0 : i32
    return %c0_i32, %c0_i32_0 : i32, i32
  }
  func.func @transform_9(%arg0: i32) -> (i32, i32) {
    %c0_i32 = arith.constant 0 : i32
    %c0_i32_0 = arith.constant 0 : i32
    %c0_i32_1 = arith.constant 0 : i32
    return %c0_i32, %c0_i32_0 : i32, i32
  }
  func.func @transform_10(%arg0: i32) -> (i32, i32) {
    %c0_i32 = arith.constant 0 : i32
    %c0_i32_0 = arith.constant 0 : i32
    %c0_i32_1 = arith.constant 0 : i32
    return %c0_i32, %c0_i32_0 : i32, i32
  }
  func.func @transform_11(%arg0: i32) -> (i32, i32) {
    %c0_i32 = arith.constant 0 : i32
    %c0_i32_0 = arith.constant 0 : i32
    %c0_i32_1 = arith.constant 0 : i32
    return %c0_i32, %c0_i32_0 : i32, i32
  }
  func.func @transform_12(%arg0: i32) -> (i32, i32) {
    %c0_i32 = arith.constant 0 : i32
    %c0_i32_0 = arith.constant 0 : i32
    %c0_i32_1 = arith.constant 0 : i32
    return %c0_i32, %c0_i32_0 : i32, i32
  }
  func.func @transform_13(%arg0: i32) -> (i32, i32) {
    %c0_i32 = arith.constant 0 : i32
    %c0_i32_0 = arith.constant 0 : i32
    %c0_i32_1 = arith.constant 0 : i32
    return %c0_i32, %c0_i32_0 : i32, i32
  }
  func.func @transform_14(%arg0: i32) -> (i32, i32) {
    %c0_i32 = arith.constant 0 : i32
    %c0_i32_0 = arith.constant 0 : i32
    %c0_i32_1 = arith.constant 0 : i32
    return %c0_i32, %c0_i32_0 : i32, i32
  }
  func.func @transform_15(%arg0: i32) -> (i32, i32) {
    %c0_i32 = arith.constant 0 : i32
    %c0_i32_0 = arith.constant 0 : i32
    %c0_i32_1 = arith.constant 0 : i32
    return %c0_i32, %c0_i32_0 : i32, i32
  }
}

</mosaic_0001>

<bundles_post_ra>
// kernel: tpu_custom_call.1
= control target key start
LH: loop header
LB: loop body
LE: loop exit
PB: predicated region body
PF: predicated region fallthrough
CT: control target
= control target key end

     0   :  { %v2742_v0 = vmov 0   ;;  %v69_v15 = vlaneseq  ;;  %v2743_v25 = vmov 1.0   ;;  %v2744_v29 = vmov 0.0   ;;  %s3508_s0 = inlined_call_operand.vmem [shape: f32[128,1], index: 0, kind: input, shape index: {}]   ;;  %s3509_s1 = inlined_call_operand.vmem [shape: f32[3,32], index: 1, kind: input, shape index: {}]   ;;  %s3510_s2 = inlined_call_operand.vmem [shape: f32[1,32], index: 2, kind: input, shape index: {}]   ;;  %s3511_s3 = inlined_call_operand.vmem [shape: f32[1,32], index: 3, kind: input, shape index: {}]   ;;  %s3512_s4 = inlined_call_operand.vmem [shape: bf16[96,32], index: 4, kind: input, shape index: {}]   ;;  %s3513_s5 = inlined_call_operand.vmem [shape: f32[1,32], index: 5, kind: input, shape index: {}]   ;;  %s3514_s6 = inlined_call_operand.vmem [shape: f32[1,32], index: 6, kind: input, shape index: {}]   ;;  %s3515_s7 = inlined_call_operand.vmem [shape: bf16[96,32], index: 7, kind: input, shape index: {}]   ;;  %s3516_s10 = inlined_call_operand.vmem [shape: bf16[96,32], index: 10, kind: input, shape index: {}]   ;;  %s3517_s8 = inlined_call_operand.vmem [shape: f32[1,32], index: 8, kind: input, shape index: {}]   ;;  %s3518_s9 = inlined_call_operand.vmem [shape: f32[1,32], index: 9, kind: input, shape index: {}]   ;;  %s3519_s14 = inlined_call_operand.<no memory space> [shape: f32[1,1], index: 14, kind: input, shape index: {}]   ;;  %s3520_s11 = inlined_call_operand.vmem [shape: f32[1,32], index: 11, kind: input, shape index: {}]   ;;  %s3521_s12 = inlined_call_operand.vmem [shape: f32[1,32], index: 12, kind: input, shape index: {}]   ;;  %s3522_s13 = inlined_call_operand.vmem [shape: f32[1,32], index: 13, kind: input, shape index: {}]   ;;  %s3523_s15 = inlined_call_operand.vmem [shape: f32[8,1], index: 15, kind: output, shape index: {}]  }
   0x1   :  { %2715 = vset.pattern.permute.xlu1 %v2742_v0  ;;  %2714 = vset.pattern.permute.xlu0 %v2742_v0  ;;  %v68_v1 = vld [vmem:[%s3508_s0 + $0x78] sm:$0xff]  ;;  %v66_v2 = vld [vmem:[%s3508_s0 + $0x68] sm:$0xff]  ;;  %v67_v3 = vld [vmem:[%s3508_s0 + $0x70] sm:$0xff] }
   0x2   :  { %366 = vperm.xlu0 %2714, %v68_v1   ;;  %356 = vperm.xlu1 %2715, %v66_v2   ;;  %v65_v4 = vld [vmem:[%s3508_s0 + $0x60] sm:$0xff]  ;;  %v64_v5 = vld [vmem:[%s3508_s0 + $0x58] sm:$0xff]  ;;  %v63_v6 = vld [vmem:[%s3508_s0 + $0x50] sm:$0xff]  ;;  %v2868_v16 = vshrl.u32 %v69_v15, 7  ;;  %v2880_v21 = vand.u32 127, %v69_v15 }
   0x3   :  { %v62_v7 = vld [vmem:[%s3508_s0 + $0x48] sm:$0xff]  ;;  %v61_v8 = vld [vmem:[%s3508_s0 + $0x40] sm:$0xff]  ;;  %v60_v9 = vld [vmem:[%s3508_s0 + $0x38] sm:$0xff] }
   0x4   :  { %v59_v10 = vld [vmem:[%s3508_s0 + $0x30] sm:$0xff]  ;;  %v58_v11 = vld [vmem:[%s3508_s0 + $0x28] sm:$0xff]  ;;  %v57_v12 = vld [vmem:[%s3508_s0 + $0x20] sm:$0xff]  ;;  %v71_v19 = vadd.s32 8, %v2868_v16  ;;  %v2878_v20 = vmul.u32 2, %v2868_v16  ;;  %v84_v22 = vand.u32 31, %v2868_v16 }
   0x5   :  { %v56_v13 = vld [vmem:[%s3508_s0 + $0x18] sm:$0xff]  ;;  %v55_v14 = vld [vmem:[%s3508_s0 + $0x10] sm:$0xff]  ;;  %v54_v17 = vld [vmem:[%s3508_s0 + $0x8] sm:$0xff]  ;;  %v1392_v26 = vand.u32 7, %v2868_v16 }
   0x6   :  { %361 = vperm.xlu0 %2714, %v67_v3   ;;  %351 = vperm.xlu1 %2715, %v65_v4   ;;  %v53_v18 = vld [vmem:[%s3508_s0] sm:$0xff]  ;;  %v2884_v23 = vadd.s32 4294967295, %v2878_v20  ;;  %v2886_v24 = vmul.u32 2, %v71_v19  ;;  %vm176_vm0 = vcmp.ne.s32.totalorder %v84_v22, 0  ;;  %vm216_vm2 = vcmp.eq.s32.totalorder %v2880_v21, %v2878_v20 }
   0x7   :  { %2460 = vmatprep.mubr.msk.f32.mxu0 %vm216_vm2, %v2743_v25  ;;  %vm1412_vm4 = vcmp.ne.s32.totalorder %v1392_v26, 0  ;;  %v1399_v28 = vand.u32 7, %v71_v19  ;;  %v2921_v33 = vadd.s32 1, %v2878_v20  ;;  %v2928_v34 = vld [vmem:[%s3509_s1] ss:$0 sm:$0xff] }
   0x8   :  { %vm200_vm1 = vcmp.eq.s32.totalorder %v2880_v21, %v2884_v23  ;;  %v2902_v27 = vadd.s32 4294967295, %v2886_v24  ;;  %v2933_v35 = vld [vmem:[%s3509_s1 + $0x1] ss:$0 sm:$0xff]  ;;  %vm217_vm10 = vcmp.eq.s32.totalorder %v2880_v21, %v2886_v24 }
   0x9   :  { %vm208_vm3 = vmand %vm200_vm1, %vm176_vm0  ;;  %vm1413_vm7 = vcmp.ne.s32.totalorder %v1399_v28, 0  ;;  %vm232_vm9 = vcmp.eq.s32.totalorder %v2880_v21, %v2921_v33 }
   0xa   :  { %346 = vperm.xlu0 %2714, %v64_v5   ;;  %341 = vperm.xlu1 %2715, %v63_v6   ;;  %vm1414_vm5 = vmand %vm200_vm1, %vm1412_vm4  ;;  %vm201_vm6 = vcmp.eq.s32.totalorder %v2880_v21, %v2902_v27 }
   0xb   :  { %2504 = vmatprep.mubr.msk.f32.mxu1 %vm208_vm3, %v2743_v25  ;;  %v2910_v30 = vsel %vm1414_vm5, 1.0, %v2744_v29  ;;  %vm1415_vm8 = vmand %vm201_vm6, %vm1413_vm7 }
   0xc   :  { %v2916_v31 = vsel %vm1415_vm8, 1.0, %v2744_v29 }
   0xd   :  { %v1420_v32 = vpack.c.bf16 %v2916_v31, %v2910_v30  ;;  %v2722_v30 = vld [vmem:[%s3515_s7 + $0x18] sm:$0xff]   ;;  %v2723_v31 = vld [vmem:[%s3515_s7 + $0x8] sm:$0xff]  }
   0xe   :  { %336 = vperm.xlu0 %2714, %v62_v7   ;;  %331 = vperm.xlu1 %2715, %v61_v8   ;;  %v3008_v8 = vadd.s32 16, %v2868_v16 }
  0x12   :  { %326 = vperm.xlu0 %2714, %v60_v9   ;;  %321 = vperm.xlu1 %2715, %v59_v10   ;;  %v73_v9 = vadd.s32 24, %v2868_v16 }
  0x16   :  { %316 = vperm.xlu0 %2714, %v58_v11   ;;  %311 = vperm.xlu1 %2715, %v57_v12   ;;  %v74_v12 = vadd.s32 32, %v2868_v16 }
  0x18   :  { %v3033_v28 = vmul.u32 2, %v74_v12 }
  0x1a   :  { %306 = vperm.xlu0 %2714, %v56_v13   ;;  %301 = vperm.xlu1 %2715, %v55_v14   ;;  %vm220_vm3 = vcmp.eq.s32.totalorder %v2880_v21, %v3033_v28 }
  0x1e   :  { %296 = vperm.xlu0 %2714, %v54_v17   ;;  %291 = vperm.xlu1 %2715, %v53_v18   ;;  %v3023_v17 = vmul.u32 2, %v3008_v8  ;;  %v3025_v18 = vmul.u32 2, %v73_v9  ;;  %v228_v9 = vadd.s32 1, %v3033_v28 }
  0x20   :  { %vm218_vm11 = vcmp.eq.s32.totalorder %v2880_v21, %v3023_v17  ;;  %vm3524_vm0 = vcmp.eq.s32.totalorder %v2880_v21, %v3025_v18 }
  0x21   :  { %v2201_v20 = vsel %vm218_vm11, 1.0, %v2744_v29 }
  0x7d   :  { %v2935_v36 = vpop.permute.xlu0 %366  ;;  %v2937_v37 = vpop.permute.xlu1 %356 }
  0x7e   :  { %v409_v38 = vmul.f32 %v2933_v35, %v2935_v36  ;;  %v388_v39 = vmul.f32 %v2928_v34, %v2935_v36  ;;  %v407_v44 = vmul.f32 %v2933_v35, %v2937_v37  ;;  %v386_v45 = vmul.f32 %v2928_v34, %v2937_v37 }
  0x80   :  { %2428 = vmatprep.subr.mxu0 %v409_v38  ;;  %2472 = vmatprep.subr.mxu1 %v388_v39 }
  0x81   :  { %v2943_v40 = vpop.permute.xlu0 %361  ;;  %v2945_v41 = vpop.permute.xlu1 %351  ;;  %2429 = vmatpush3.msra.mxu0 %v409_v38  ;;  %2473 = vmatpush3.msra.mxu1 %v388_v39  ;;  %v75_v38 = vadd.s32 40, %v2868_v16 }
  0x82   :  { %v387_v42 = vmul.f32 %v2928_v34, %v2943_v40  ;;  %v408_v43 = vmul.f32 %v2933_v35, %v2943_v40  ;;  %v406_v48 = vmul.f32 %v2933_v35, %v2945_v41  ;;  %v385_v49 = vmul.f32 %v2928_v34, %v2945_v41 }
  0x84   :  { %2430 = vmatprep.subr.mxu0 %v408_v43  ;;  %2474 = vmatprep.subr.mxu1 %v387_v42 }
  0x85   :  { %2431 = vmatpush3.msra.mxu0 %v408_v43  ;;  %2475 = vmatpush3.msra.mxu1 %v387_v42  ;;  %v2955_v46 = vpop.permute.xlu0 %346  ;;  %v2957_v47 = vpop.permute.xlu1 %341  ;;  %v3041_v43 = vadd.s32 4294967295, %v3023_v17 }
  0x86   :  { %2432 = vmatprep.subr.mxu0 %v407_v44  ;;  %2476 = vmatprep.subr.mxu1 %v386_v45  ;;  %v384_v50 = vmul.f32 %v2928_v34, %v2955_v46  ;;  %v405_v51 = vmul.f32 %v2933_v35, %v2955_v46  ;;  %v383_v54 = vmul.f32 %v2928_v34, %v2957_v47 }
  0x87   :  { %2433 = vmatpush3.msra.mxu0 %v407_v44  ;;  %2477 = vmatpush3.msra.mxu1 %v386_v45  ;;  %v404_v55 = vmul.f32 %v2933_v35, %v2957_v47  ;;  %v3044_v44 = vadd.s32 4294967295, %v3025_v18  ;;  %v3049_v45 = vld [vmem:[%s3509_s1 + $0x2] ss:$0 sm:$0xff]  ;;  %vm202_vm12 = vcmp.eq.s32.totalorder %v2880_v21, %v3041_v43 }
  0x88   :  { %2434 = vmatprep.subr.mxu0 %v406_v48  ;;  %2478 = vmatprep.subr.mxu1 %v385_v49 }
  0x89   :  { %2435 = vmatpush3.msra.mxu0 %v406_v48  ;;  %v2967_v52 = vpop.permute.xlu0 %336  ;;  %v2969_v53 = vpop.permute.xlu1 %331  ;;  %2479 = vmatpush3.msra.mxu1 %v385_v49  ;;  %vm203_vm13 = vcmp.eq.s32.totalorder %v2880_v21, %v3044_v44  ;;  %v2200_v44 = vsel %vm217_vm10, 1.0, %v2744_v29 }
  0x8a   :  { %2436 = vmatprep.subr.mxu0 %v405_v51  ;;  %2480 = vmatprep.subr.mxu1 %v384_v50  ;;  %v382_v56 = vmul.f32 %v2928_v34, %v2967_v52  ;;  %v403_v57 = vmul.f32 %v2933_v35, %v2967_v52  ;;  %v381_v60 = vmul.f32 %v2928_v34, %v2969_v53 }
  0x8b   :  { %2437 = vmatpush3.msra.mxu0 %v405_v51  ;;  %2481 = vmatpush3.msra.mxu1 %v384_v50  ;;  %v402_v61 = vmul.f32 %v2933_v35, %v2969_v53  ;;  %v112_v50 = vand.u32 31, %v74_v12  ;;  %v76_v51 = vadd.s32 48, %v2868_v16 }
  0x8c   :  { %2438 = vmatprep.subr.mxu0 %v404_v55  ;;  %2482 = vmatprep.subr.mxu1 %v383_v54 }
  0x8d   :  { %v2979_v58 = vpop.permute.xlu0 %326  ;;  %v2981_v59 = vpop.permute.xlu1 %321  ;;  %2439 = vmatpush3.msra.mxu0 %v404_v55  ;;  %2483 = vmatpush3.msra.mxu1 %v383_v54  ;;  %v2187_v54 = vadd.s32 4294967295, %v3033_v28  ;;  %v3059_v55 = vmul.u32 2, %v75_v38  ;;  %vm3078_vm14 = vcmp.ne.s32.totalorder %v112_v50, 0 }
  0x8e   :  { %2440 = vmatprep.subr.mxu0 %v403_v57  ;;  %2484 = vmatprep.subr.mxu1 %v382_v56  ;;  %v380_v62 = vmul.f32 %v2928_v34, %v2979_v58  ;;  %v401_v63 = vmul.f32 %v2933_v35, %v2979_v58  ;;  %v379_v2 = vmul.f32 %v2928_v34, %v2981_v59 }
  0x8f   :  { %2441 = vmatpush3.msra.mxu0 %v403_v57  ;;  %2485 = vmatpush3.msra.mxu1 %v382_v56  ;;  %v400_v3 = vmul.f32 %v2933_v35, %v2981_v59  ;;  %v77_v56 = vadd.s32 56, %v2868_v16  ;;  %v429_v57 = vmul.f32 %v3049_v45, %v2943_v40  ;;  %vm204_vm15 = vcmp.eq.s32.totalorder %v2880_v21, %v2187_v54 }
  0x90   :  { %2442 = vmatprep.subr.mxu0 %v402_v61  ;;  %2486 = vmatprep.subr.mxu1 %v381_v60  ;;  %v428_v40 = vmul.f32 %v3049_v45, %v2937_v37  ;;  %vm212_vm4 = vmand %vm204_vm15, %vm3078_vm14  ;;  %vm221_vm7 = vcmp.eq.s32.totalorder %v2880_v21, %v3059_v55 }
  0x91   :  { %v2991_v0 = vpop.permute.xlu0 %316  ;;  %v2993_v1 = vpop.permute.xlu1 %311  ;;  %2443 = vmatpush3.msra.mxu0 %v402_v61  ;;  %2487 = vmatpush3.msra.mxu1 %v381_v60  ;;  %v2188_v60 = vadd.s32 4294967295, %v3059_v55  ;;  %v3092_v61 = vmul.u32 2, %v77_v56 }
  0x92   :  { %2444 = vmatprep.subr.mxu0 %v401_v63  ;;  %2488 = vmatprep.subr.mxu1 %v380_v62  ;;  %v378_v4 = vmul.f32 %v2928_v34, %v2991_v0  ;;  %v399_v5 = vmul.f32 %v2933_v35, %v2991_v0  ;;  %v377_v10 = vmul.f32 %v2928_v34, %v2993_v1 }
  0x93   :  { %2445 = vmatpush3.msra.mxu0 %v401_v63  ;;  %2489 = vmatpush3.msra.mxu1 %v380_v62  ;;  %v398_v11 = vmul.f32 %v2933_v35, %v2993_v1  ;;  %v427_v63 = vmul.f32 %v3049_v45, %v2945_v41  ;;  %vm205_vm5 = vcmp.eq.s32.totalorder %v2880_v21, %v2188_v60  ;;  %v2190_v37 = vadd.s32 4294967295, %v3092_v61 }
  0x94   :  { %2446 = vmatprep.subr.mxu0 %v400_v3  ;;  %2490 = vmatprep.subr.mxu1 %v379_v2  ;;  %v425_v41 = vmul.f32 %v3049_v45, %v2957_v47  ;;  %v423_v47 = vmul.f32 %v3049_v45, %v2969_v53  ;;  %v420_v53 = vmul.f32 %v3049_v45, %v2991_v0  ;;  %v231_v12 = vadd.s32 1, %v3092_v61 }
  0x95   :  { %v3003_v6 = vpop.permute.xlu0 %306  ;;  %2447 = vmatpush3.msra.mxu0 %v400_v3  ;;  %2491 = vmatpush3.msra.mxu1 %v379_v2  ;;  %v3005_v7 = vpop.permute.xlu1 %301  ;;  %v426_v2 = vmul.f32 %v3049_v45, %v2955_v46  ;;  %vm207_vm15 = vcmp.eq.s32.totalorder %v2880_v21, %v2190_v37  ;;  %v424_v46 = vmul.f32 %v3049_v45, %v2967_v52 }
  0x96   :  { %2448 = vmatprep.subr.mxu0 %v399_v5  ;;  %2492 = vmatprep.subr.mxu1 %v378_v4  ;;  %v376_v13 = vmul.f32 %v2928_v34, %v3003_v6  ;;  %v397_v14 = vmul.f32 %v2933_v35, %v3003_v6  ;;  %v375_v19 = vmul.f32 %v2928_v34, %v3005_v7 }
  0x97   :  { %2449 = vmatpush3.msra.mxu0 %v399_v5  ;;  %2493 = vmatpush3.msra.mxu1 %v378_v4  ;;  %v396_v22 = vmul.f32 %v2933_v35, %v3005_v7  ;;  %v422_v52 = vmul.f32 %v3049_v45, %v2979_v58  ;;  %v421_v3 = vmul.f32 %v3049_v45, %v2981_v59  ;;  %v225_v5 = vadd.s32 1, %v2886_v24 }
  0x98   :  { %2450 = vmatprep.subr.mxu0 %v398_v11  ;;  %2494 = vmatprep.subr.mxu1 %v377_v10  ;;  %v419_v4 = vmul.f32 %v3049_v45, %v2993_v1  ;;  %v418_v58 = vmul.f32 %v3049_v45, %v3003_v6  ;;  %v417_v59 = vmul.f32 %v3049_v45, %v3005_v7  ;;  %v3163_v1 = vadd.s32 1, %v3023_v17  ;;  %v2717_v17 = vld [vmem:[%s3512_s4 + $0x18] sm:$0xff]  }
  0x99   :  { %2451 = vmatpush3.msra.mxu0 %v398_v11  ;;  %2495 = vmatpush3.msra.mxu1 %v377_v10  ;;  %v3020_v15 = vpop.permute.xlu0 %296  ;;  %v3031_v26 = vpop.permute.xlu1 %291  ;;  %v3169_v7 = vadd.s32 1, %v3025_v18  ;;  %v229_v10 = vadd.s32 1, %v3059_v55 }
  0x9a   :  { %2452 = vmatprep.subr.mxu0 %v397_v14  ;;  %2496 = vmatprep.subr.mxu1 %v376_v13  ;;  %v374_v39 = vmul.f32 %v2928_v34, %v3020_v15  ;;  %v395_v42 = vmul.f32 %v2933_v35, %v3020_v15  ;;  %v373_v48 = vmul.f32 %v2928_v34, %v3031_v26 }
  0x9b   :  { %2453 = vmatpush3.msra.mxu0 %v397_v14  ;;  %2497 = vmatpush3.msra.mxu1 %v376_v13  ;;  %v394_v49 = vmul.f32 %v2933_v35, %v3031_v26  ;;  %v430_v34 = vmul.f32 %v3049_v45, %v2935_v36  ;;  %v3082_v36 = vmul.u32 2, %v76_v51  ;;  %v416_v0 = vmul.f32 %v3049_v45, %v3020_v15 }
  0x9c   :  { %2454 = vmatprep.subr.mxu0 %v396_v22  ;;  %2498 = vmatprep.subr.mxu1 %v375_v19  ;;  %v415_v6 = vmul.f32 %v3049_v45, %v3031_v26  ;;  %v862_v13 = vand.u32 15, %v2868_v16  ;;  %v2243_v26 = vsel %vm201_vm6, 1.0, %v2744_v29 }
  0x9d   :  { %2455 = vmatpush3.msra.mxu0 %v396_v22  ;;  %2499 = vmatpush3.msra.mxu1 %v375_v19  ;;  %v2189_v62 = vadd.s32 4294967295, %v3082_v36  ;;  %vm222_vm8 = vcmp.eq.s32.totalorder %v2880_v21, %v3082_v36  ;;  %v230_v11 = vadd.s32 1, %v3082_v36 }
  0x9e   :  { %2456 = vmatprep.subr.mxu0 %v395_v42  ;;  %2500 = vmatprep.subr.mxu1 %v374_v39 }
  0x9f   :  { %2457 = vmatpush3.msra.mxu0 %v395_v42  ;;  %2501 = vmatpush3.msra.mxu1 %v374_v39  ;;  %vm206_vm14 = vcmp.eq.s32.totalorder %v2880_v21, %v2189_v62 }
  0xa0   :  { %2458 = vmatprep.subr.mxu0 %v394_v49  ;;  %2502 = vmatprep.subr.mxu1 %v373_v48 }
  0xa1   :  { %2459 = vmatpush3.msra.mxu0 %v394_v49  ;;  %2503 = vmatpush3.msra.mxu1 %v373_v48 }
  0xa2   :  { %2461 = vmatmul.mubr.msk.f32.vlgmr.msra.gmra.mxu0 %vm217_vm10, %v2743_v25  ;;  %2505 = vmatmul.mubr.msk.f32.vlgmr.msra.gmra.mxu1 %vm201_vm6, %v2743_v25  ;;  %vm754_vm6 = vcmask 261120   ;;  %vm2745_vm10 = vmmov 0  }
  0xa3   :  { %2516 = vmatprep.subr.mxu0 %v430_v34  ;;  %2463 = vmatprep.mubr.msk.f32.mxu0 %vm218_vm11, %v2743_v25 }
  0xa4   :  { %2517 = vmatpush3.msra.mxu0 %v430_v34  ;;  %2507 = vmatprep.mubr.msk.f32.mxu1 %vm202_vm12, %v2743_v25 }
  0xa5   :  { %2518 = vmatprep.subr.mxu0 %v429_v57 }
  0xa6   :  { %2519 = vmatpush3.msra.mxu0 %v429_v57  ;;  %2508 = vmatmul.mubr.msk.f32.gmra.mxu1 %vm203_vm13, %v2743_v25 }
  0xa7   :  { %2520 = vmatprep.subr.mxu0 %v428_v40  ;;  %2464 = vmatmul.mubr.msk.f32.gmra.mxu0 %vm3524_vm0, %v2743_v25  ;;  %vm906_vm0 = vcmp.ne.s32.totalorder %v862_v13, 0 }
  0xa8   :  { %2521 = vmatpush3.msra.mxu0 %v428_v40  ;;  %2466 = vmatprep.mubr.msk.f32.mxu0 %vm220_vm3, %v2743_v25  ;;  %vm223_vm3 = vcmp.eq.s32.totalorder %v2880_v21, %v3092_v61 }
  0xa9   :  { %2522 = vmatprep.subr.mxu0 %v427_v63  ;;  %2510 = vmatprep.mubr.msk.f32.mxu1 %vm212_vm4, %v2743_v25  ;;  %vm233_vm4 = vcmp.eq.s32.totalorder %v2880_v21, %v225_v5 }
  0xaa   :  { %2523 = vmatpush3.msra.mxu0 %v427_v63  ;;  %2511 = vmatmul.mubr.msk.f32.gmra.mxu1 %vm205_vm5, %v2743_v25  ;;  %vm234_vm5 = vcmp.eq.s32.totalorder %v2880_v21, %v3163_v1  ;;  %v2208_v28 = vsel %vm233_vm4, 1.0, %v2744_v29 }
  0xab   :  { %2524 = vmatprep.subr.mxu0 %v426_v2  ;;  %2467 = vmatmul.mubr.msk.f32.gmra.mxu0 %vm221_vm7, %v2743_v25  ;;  %vm235_vm7 = vcmp.eq.s32.totalorder %v2880_v21, %v3169_v7 }
  0xac   :  { %2525 = vmatpush3.msra.mxu0 %v426_v2  ;;  %2469 = vmatprep.mubr.msk.f32.mxu0 %vm222_vm8, %v2743_v25  ;;  %vm236_vm8 = vcmp.eq.s32.totalorder %v2880_v21, %v228_v9  ;;  %v2210_v43 = vsel %vm235_vm7, 1.0, %v2744_v29 }
  0xad   :  { %2526 = vmatprep.subr.mxu0 %v425_v41  ;;  %2513 = vmatprep.mubr.msk.f32.mxu1 %vm206_vm14, %v2743_v25  ;;  %vm237_vm14 = vcmp.eq.s32.totalorder %v2880_v21, %v229_v10 }
  0xae   :  { %2527 = vmatpush3.msra.mxu0 %v425_v41  ;;  %2514 = vmatmul.mubr.msk.f32.gmra.mxu1 %vm207_vm15, %v2743_v25  ;;  %vm238_vm15 = vcmp.eq.s32.totalorder %v2880_v21, %v230_v11 }
  0xaf   :  { %2528 = vmatprep.subr.mxu0 %v424_v46  ;;  %2470 = vmatmul.mubr.msk.f32.gmra.mxu0 %vm223_vm3, %v2743_v25  ;;  %vm239_vm3 = vcmp.eq.s32.totalorder %v2880_v21, %v231_v12 }
  0xb0   :  { %2529 = vmatpush3.msra.mxu0 %v424_v46  ;;  %2548 = vmatprep.mubr.msk.f32.mxu0 %vm232_vm9, %v2743_v25 }
  0xb1   :  { %2530 = vmatprep.subr.mxu0 %v423_v47 }
  0xb2   :  { %2531 = vmatpush3.msra.mxu0 %v423_v47 }
  0xb3   :  { %2532 = vmatprep.subr.mxu0 %v422_v52 }
  0xb4   :  { %2533 = vmatpush3.msra.mxu0 %v422_v52 }
  0xb5   :  { %2534 = vmatprep.subr.mxu0 %v421_v3 }
  0xb6   :  { %2535 = vmatpush3.msra.mxu0 %v421_v3 }
  0xb7   :  { %2536 = vmatprep.subr.mxu0 %v420_v53 }
  0xb8   :  { %2537 = vmatpush3.msra.mxu0 %v420_v53 }
  0xb9   :  { %2538 = vmatprep.subr.mxu0 %v419_v4 }
  0xba   :  { %2539 = vmatpush3.msra.mxu0 %v419_v4 }
  0xbb   :  { %2540 = vmatprep.subr.mxu0 %v418_v58 }
  0xbc   :  { %2541 = vmatpush3.msra.mxu0 %v418_v58 }
  0xbd   :  { %2542 = vmatprep.subr.mxu0 %v417_v59 }
  0xbe   :  { %2543 = vmatpush3.msra.mxu0 %v417_v59 }
  0xbf   :  { %2544 = vmatprep.subr.mxu0 %v416_v0 }
  0xc0   :  { %2545 = vmatpush3.msra.mxu0 %v416_v0 }
  0xc1   :  { %2546 = vmatprep.subr.mxu0 %v415_v6 }
  0xc2   :  { %2547 = vmatpush3.msra.mxu0 %v415_v6 }
  0xc3   :  { %2549 = vmatmul.mubr.msk.f32.vlgmr.msra.gmra.mxu0 %vm233_vm4, %v2743_v25 }
  0xc4   :  { %2551 = vmatprep.mubr.msk.f32.mxu0 %vm234_vm5, %v2743_v25 }
  0xc7   :  { %2552 = vmatmul.mubr.msk.f32.gmra.mxu0 %vm235_vm7, %v2743_v25 }
  0xc8   :  { %2554 = vmatprep.mubr.msk.f32.mxu0 %vm236_vm8, %v2743_v25  ;;  %vm910_vm8 = vmand %vm200_vm1, %vm906_vm0  ;;  %vm932_vm0 = vcmask 523264  }
  0xc9   :  { %v2242_v22 = vsel %vm910_vm8, 1.0, %v2744_v29 }
  0xca   :  { %v922_v38 = vpack.c.bf16 %v2243_v26, %v2242_v22 }
  0xcb   :  { %2555 = vmatmul.mubr.msk.f32.gmra.mxu0 %vm237_vm14, %v2743_v25 }
  0xcc   :  { %2557 = vmatprep.mubr.msk.f32.mxu0 %vm238_vm15, %v2743_v25  ;;  %2568 = vmatprep.mubr.msk.bf16.mxu1 %vm932_vm0, %v922_v38 }
  0xcf   :  { %2558 = vmatmul.mubr.msk.f32.gmra.mxu0 %vm239_vm3, %v2743_v25  ;;  %v3211_v25 = vsel %vm232_vm9, 1.0, %v2744_v29 }
  0xd0   :  { %v3217_v39 = vpack.c.bf16 %v2208_v28, %v3211_v25  ;;  %v1805_v23 = vpack.c.bf16 %v3211_v25, %v3211_v25 }
  0xd2   :  { %2592 = vmatprep.mubr.msk.bf16.mxu0 %vm932_vm0, %v3217_v39 }
 0x162   :  { %v2462_v14 = vpop.f32.mrf.mxu0  ;;  %v2506_v45 = vpop.f32.mrf.mxu1 }
 0x163   :  { %v608_v34 = vadd.f32 %v2506_v45, %v2462_v14 }
 0x164   :  { %v497_v15 = vpop.f32.mrf.mxu0  ;;  %v602_v27 = vpop.f32.mrf.mxu1 }
 0x165   :  { %v603_v35 = vadd.f32 %v602_v27, %v497_v15 }
 0x166   :  { %v2509_v33 = vpop.f32.mrf.mxu1 }
 0x167   :  { %v2465_v19 = vpop.f32.mrf.mxu0 }
 0x168   :  { %v612_v50 = vpop.f32.mrf.mxu1  ;;  %v618_v62 = vadd.f32 %v2509_v33, %v2465_v19 }
 0x169   :  { %v507_v42 = vpop.f32.mrf.mxu0 }
 0x16a   :  { %v2512_v54 = vpop.f32.mrf.mxu1  ;;  %v613_v63 = vadd.f32 %v612_v50, %v507_v42 }
 0x16b   :  { %v2468_v48 = vpop.f32.mrf.mxu0 }
 0x16c   :  { %v622_v36 = vpop.f32.mrf.mxu1  ;;  %v628_v4 = vadd.f32 %v2512_v54, %v2468_v48 }
 0x16d   :  { %v517_v49 = vpop.f32.mrf.mxu0 }
 0x16e   :  { %v2515_v2 = vpop.f32.mrf.mxu1  ;;  %v623_v58 = vadd.f32 %v622_v36, %v517_v49 }
 0x16f   :  { %v2471_v51 = vpop.f32.mrf.mxu0 }
 0x170   :  { %v632_v5 = vpop.f32.mrf.mxu1  ;;  %v638_v14 = vadd.f32 %v2515_v2, %v2471_v51 }
 0x171   :  { %v527_v55 = vpop.f32.mrf.mxu0 }
 0x172   :  { %v633_v15 = vadd.f32 %v632_v5, %v527_v55 }
 0x183   :  { %v2550_v56 = vpop.f32.mrf.mxu0 }
 0x184   :  { %v3222_v60 = vadd.f32 %v2550_v56, %v608_v34 }
 0x185   :  { %v707_v57 = vpop.f32.mrf.mxu0 }
 0x186   :  { %v3224_v61 = vadd.f32 %v707_v57, %v603_v35  ;;  %v756_v46 = vsel %vm754_vm6, %v3222_v60, 0.0 }
 0x187   :  { %v2553_v40 = vpop.f32.mrf.mxu0 }
 0x188   :  { %v755_v37 = vsel %vm754_vm6, %v3224_v61, 0.0  ;;  %v3230_v47 = vadd.f32 %v2553_v40, %v618_v62 }
 0x189   :  { %v717_v41 = vpop.f32.mrf.mxu0  ;;  %v757_v3 = vadd.f32 %v756_v46, %v755_v37 }
 0x18a   :  { %v3232_v52 = vadd.f32 %v717_v41, %v613_v63  ;;  %v760_v9 = vsel %vm754_vm6, %v3230_v47, 0.0 }
 0x18b   :  { %v2556_v53 = vpop.f32.mrf.mxu0 }
 0x18c   :  { %v758_v59 = vsel %vm754_vm6, %v3232_v52, 0.0  ;;  %v3238_v10 = vadd.f32 %v2556_v53, %v628_v4 }
 0x18d   :  { %v759_v0 = vadd.f32 %v758_v59, %v757_v3  ;;  %v727_v6 = vpop.f32.mrf.mxu0 }
 0x18e   :  { %v3240_v11 = vadd.f32 %v727_v6, %v623_v58  ;;  %v764_v28 = vsel %vm754_vm6, %v3238_v10, 0.0 }
 0x18f   :  { %v761_v12 = vadd.f32 %v760_v9, %v759_v0  ;;  %v2559_v13 = vpop.f32.mrf.mxu0 }
 0x190   :  { %v762_v19 = vsel %vm754_vm6, %v3240_v11, 0.0  ;;  %v3246_v38 = vadd.f32 %v2559_v13, %v638_v14 }
 0x191   :  { %v763_v22 = vadd.f32 %v762_v19, %v761_v12  ;;  %v737_v26 = vpop.f32.mrf.mxu0 }
 0x192   :  { %v3248_v42 = vadd.f32 %v737_v26, %v633_v15  ;;  %v768_v33 = vsel %vm754_vm6, %v3246_v38, 0.0 }
 0x193   :  { %v765_v45 = vadd.f32 %v764_v28, %v763_v22 }
 0x194   :  { %v766_v48 = vsel %vm754_vm6, %v3248_v42, 0.0 }
 0x195   :  { %v767_v27 = vadd.f32 %v766_v48, %v765_v45 }
 0x197   :  { %v769_v49 = vadd.f32 %v768_v33, %v767_v27 }
 0x199   :  { %v770_v50 = vrot.slane %v769_v49, 4 }
 0x19b   :  { %v771_v51 = vadd.f32 %v770_v50, %v769_v49 }
 0x19d   :  { %v772_v54 = vrot.slane %v771_v51, 2 }
 0x19f   :  { %v773_v55 = vadd.f32 %v772_v54, %v771_v51 }
 0x1a1   :  { %v774_v56 = vrot.slane %v773_v55, 1 }
 0x1a3   :  { %v775_v34 = vadd.f32 %v774_v56, %v773_v55 }
 0x1a5   :  { %v776_v35 = vmul.f32 0.015625, %v775_v34 }
 0x1a7   :  { %v777_v36 = vsub.f32 %v3224_v61, %v776_v35  ;;  %v778_v57 = vsub.f32 %v3222_v60, %v776_v35  ;;  %v779_v40 = vsub.f32 %v3232_v52, %v776_v35  ;;  %v780_v62 = vsub.f32 %v3230_v47, %v776_v35 }
 0x1a8   :  { %v781_v63 = vsub.f32 %v3240_v11, %v776_v35  ;;  %v782_v46 = vsub.f32 %v3238_v10, %v776_v35  ;;  %v783_v59 = vsub.f32 %v3248_v42, %v776_v35  ;;  %v784_v9 = vsub.f32 %v3246_v38, %v776_v35 }
 0x1a9   :  { %v785_v37 = vmul.f32 %v777_v36, %v777_v36  ;;  %v786_v2 = vmul.f32 %v778_v57, %v778_v57  ;;  %v787_v41 = vmul.f32 %v779_v40, %v779_v40  ;;  %v788_v3 = vmul.f32 %v780_v62, %v780_v62  ;;  %v815_v40 = vld [vmem:[%s3510_s2] sm:$0x1] }
 0x1aa   :  { %v789_v5 = vmul.f32 %v781_v63, %v781_v63  ;;  %v790_v12 = vmul.f32 %v782_v46, %v782_v46  ;;  %v791_v15 = vmul.f32 %v783_v59, %v783_v59  ;;  %v792_v26 = vmul.f32 %v784_v9, %v784_v9 }
 0x1ab   :  { %v793_v53 = vsel %vm754_vm6, %v785_v37, 0.0  ;;  %v794_v4 = vsel %vm754_vm6, %v786_v2, 0.0  ;;  %v796_v0 = vsel %vm754_vm6, %v787_v41, 0.0  ;;  %v798_v13 = vsel %vm754_vm6, %v788_v3, 0.0  ;;  %v819_v2 = vld [vmem:[%s3511_s3] sm:$0x1] }
 0x1ac   :  { %v795_v58 = vadd.f32 %v794_v4, %v793_v53  ;;  %v800_v19 = vsel %vm754_vm6, %v789_v5, 0.0  ;;  %v802_v28 = vsel %vm754_vm6, %v790_v12, 0.0  ;;  %v804_v48 = vsel %vm754_vm6, %v791_v15, 0.0 }
 0x1ad   :  { %v806_v33 = vsel %vm754_vm6, %v792_v26, 0.0  ;;  %v3274_v62 = vsub.s32 0, %v2868_v16 }
 0x1ae   :  { %v797_v6 = vadd.f32 %v796_v0, %v795_v58 }
 0x1b0   :  { %v799_v14 = vadd.f32 %v798_v13, %v797_v6 }
 0x1b2   :  { %v801_v22 = vadd.f32 %v800_v19, %v799_v14 }
 0x1b4   :  { %v803_v45 = vadd.f32 %v802_v28, %v801_v22 }
 0x1b6   :  { %v805_v27 = vadd.f32 %v804_v48, %v803_v45 }
 0x1b8   :  { %v807_v49 = vadd.f32 %v806_v33, %v805_v27 }
 0x1ba   :  { %v808_v50 = vrot.slane %v807_v49, 4 }
 0x1bc   :  { %v809_v51 = vadd.f32 %v808_v50, %v807_v49  ;;  %v2245_v50 = vsel %vm203_vm13, 1.0, %v2744_v29  ;;  %vm1807_vm13 = vcmask 130048  }
 0x1be   :  { %v810_v54 = vrot.slane %v809_v51, 2 }
 0x1c0   :  { %v811_v55 = vadd.f32 %v810_v54, %v809_v51  ;;  %v2209_v51 = vsel %vm234_vm5, 1.0, %v2744_v29  ;;  %v3310_v54 = vsel %vm216_vm2, 1.0, %v2744_v29  ;;  %vm3527_vm2 = vcmp.eq.s32.totalorder %v2880_v21, %v3025_v18  ;;  %v2718_v18 = vld [vmem:[%s3512_s4 + $0x20] sm:$0xff]   ;;  %v2728_v21 = vld [vmem:[%s3516_s10 + $0x18] sm:$0xff]  }
 0x1c1   :  { %v3317_v7 = vpack.c.bf16 %v2200_v44, %v3310_v54  ;;  %v2202_v24 = vsel %vm3527_vm2, 1.0, %v2744_v29 }
 0x1c2   :  { %v812_v56 = vrot.slane %v811_v55, 1 }
 0x1c4   :  { %v813_v34 = vadd.f32 %v812_v56, %v811_v55  ;;  %v927_v55 = vpack.c.bf16 %v2210_v43, %v2209_v51  ;;  %v925_v56 = vpack.c.bf16 %v2202_v24, %v2201_v20 }
 0x1c6   :  { %v814_v36 = vmul.f32 0.015625, %v813_v34  ;;  %v2716_v34 = vld [vmem:[%s3512_s4 + $0x28] sm:$0xff]  }
 0x1c8   :  { %v816_v57 = vadd.f32 1e-05, %v814_v36  ;;  %v2719_v36 = vld [vmem:[%s3512_s4 + $0x10] sm:$0xff]  }
 0x1ca   :  { %2734 = vrsqrt.f32 %v816_v57  ;;  %v2720_v57 = vld [vmem:[%s3512_s4 + $0x8] sm:$0xff]  }
 0x1d7   :  { %v2735_v63 = vpop.eup %2734 }
 0x1d8   :  { %v818_v37 = vmul.f32 %v2735_v63, %v815_v40 }
 0x1da   :  { %v820_v41 = vmul.f32 %v818_v37, %v776_v35  ;;  %v826_v46 = vrot.slane %v818_v37, %v3274_v62 }
 0x1dc   :  { %v821_v3 = vsub.f32 %v819_v2, %v820_v41  ;;  %v834_v53 = vmul.f32 %v826_v46, %v3248_v42  ;;  %v835_v4 = vmul.f32 %v826_v46, %v3246_v38  ;;  %v832_v59 = vmul.f32 %v826_v46, %v3240_v11 }
 0x1dd   :  { %v833_v5 = vmul.f32 %v826_v46, %v3238_v10  ;;  %v830_v0 = vmul.f32 %v826_v46, %v3232_v52  ;;  %v831_v6 = vmul.f32 %v826_v46, %v3230_v47  ;;  %v828_v26 = vmul.f32 %v826_v46, %v3224_v61 }
 0x1de   :  { %v840_v58 = vrot.slane %v821_v3, %v3274_v62  ;;  %v829_v11 = vmul.f32 %v826_v46, %v3222_v60  ;;  %v876_v10 = vand.u32 15, %v3008_v8 }
 0x1e0   :  { %v848_v9 = vadd.f32 %v840_v58, %v834_v53  ;;  %v849_v12 = vadd.f32 %v840_v58, %v835_v4  ;;  %v846_v35 = vadd.f32 %v840_v58, %v832_v59  ;;  %v847_v13 = vadd.f32 %v840_v58, %v833_v5 }
 0x1e1   :  { %v844_v14 = vadd.f32 %v840_v58, %v830_v0  ;;  %v845_v15 = vadd.f32 %v840_v58, %v831_v6  ;;  %v842_v52 = vadd.f32 %v840_v58, %v828_v26  ;;  %v843_v27 = vadd.f32 %v840_v58, %v829_v11 }
 0x1e2   :  { %v856_v19 = vmax.f32 %v848_v9, 0.0  ;;  %v857_v42 = vmax.f32 %v849_v12, 0.0  ;;  %v854_v22 = vmax.f32 %v846_v35, 0.0  ;;  %v855_v38 = vmax.f32 %v847_v13, 0.0  ;;  %v2721_v35 = vld [vmem:[%s3512_s4] sm:$0xff]  }
 0x1e3   :  { %v852_v45 = vmax.f32 %v844_v14, 0.0  ;;  %v853_v48 = vmax.f32 %v845_v15, 0.0  ;;  %vm908_vm9 = vcmp.ne.s32.totalorder %v876_v10, 0  ;;  %v850_v49 = vmax.f32 %v842_v52, 0.0 }
 0x1e4   :  { %v931_v28 = vpack.c.bf16 %v857_v42, %v856_v19  ;;  %v930_v47 = vpack.c.bf16 %v855_v38, %v854_v22  ;;  %v851_v61 = vmax.f32 %v843_v27, 0.0  ;;  %vm912_vm4 = vmand %vm202_vm12, %vm908_vm9 }
 0x1e5   :  { %v929_v33 = vpack.c.bf16 %v853_v48, %v852_v45  ;;  %v2244_v60 = vsel %vm912_vm4, 1.0, %v2744_v29 }
 0x1e6   :  { %2560 = vmatprep.subr.bf16.mxu1 %v931_v28  ;;  %2584 = vmatprep.subr.bf16.mxu0 %v931_v28  ;;  %v928_v8 = vpack.c.bf16 %v851_v61, %v850_v49  ;;  %v923_v1 = vpack.c.bf16 %v2245_v50, %v2244_v60 }
 0x1e7   :  { %2561 = vmatpush3.bf16.msra.mxu1 %v931_v28  ;;  %2585 = vmatpush3.bf16.msra.mxu0 %v931_v28 }
 0x1e8   :  { %2562 = vmatprep.subr.bf16.mxu1 %v930_v47  ;;  %2586 = vmatprep.subr.bf16.mxu0 %v930_v47 }
 0x1eb   :  { %2563 = vmatpush3.bf16.msra.mxu1 %v930_v47  ;;  %2587 = vmatpush3.bf16.msra.mxu0 %v930_v47 }
 0x1ec   :  { %2564 = vmatprep.subr.bf16.mxu1 %v929_v33  ;;  %2588 = vmatprep.subr.bf16.mxu0 %v929_v33 }
 0x1ef   :  { %2565 = vmatpush3.bf16.msra.mxu1 %v929_v33  ;;  %2589 = vmatpush3.bf16.msra.mxu0 %v929_v33 }
 0x1f0   :  { %2566 = vmatprep.subr.bf16.mxu1 %v928_v8  ;;  %2590 = vmatprep.subr.bf16.mxu0 %v928_v8 }
 0x1f3   :  { %2567 = vmatpush3.bf16.msra.mxu1 %v928_v8  ;;  %2591 = vmatpush3.bf16.msra.mxu0 %v928_v8 }
 0x1f4   :  { %2572 = vmatprep.subr.bf16.mxu1 %v931_v28  ;;  %2612 = vmatprep.subr.bf16.mxu0 %v2716_v34 }
 0x1f6   :  { %2569 = vmatmul.mubr.msk.bf16.vlgmr.msra.gmra.mxu1 %vm932_vm0, %v923_v1  ;;  %2593 = vmatmul.mubr.msk.bf16.vlgmr.msra.gmra.mxu0 %vm932_vm0, %v927_v55 }
 0x1f7   :  { %2573 = vmatpush3.bf16.msra.mxu1 %v931_v28  ;;  %2580 = vmatprep.mubr.msk.bf16.mxu1 %vm932_vm0, %v3317_v7 }
 0x1f8   :  { %2574 = vmatprep.subr.bf16.mxu1 %v930_v47  ;;  %2613 = vmatpush3.bf16.msra.mxu0 %v2716_v34 }
 0x1f9   :  { %2614 = vmatprep.subr.bf16.mxu0 %v2718_v18 }
 0x1fb   :  { %2575 = vmatpush3.bf16.msra.mxu1 %v930_v47 }
 0x1fc   :  { %2576 = vmatprep.subr.bf16.mxu1 %v929_v33  ;;  %2615 = vmatpush3.bf16.msra.mxu0 %v2718_v18 }
 0x1fd   :  { %2628 = vmatprep.subr.bf16.mxu0 %v2744_v29 }
 0x1ff   :  { %2577 = vmatpush3.bf16.msra.mxu1 %v929_v33 }
 0x200   :  { %2578 = vmatprep.subr.bf16.mxu1 %v928_v8 }
 0x203   :  { %2579 = vmatpush3.bf16.msra.mxu1 %v928_v8 }
 0x204   :  { %2596 = vmatprep.subr.bf16.mxu1 %v2717_v17 }
 0x206   :  { %2581 = vmatmul.mubr.msk.bf16.vlgmr.msra.gmra.mxu1 %vm932_vm0, %v925_v56 }
 0x207   :  { %2597 = vmatpush3.bf16.msra.mxu1 %v2717_v17 }
 0x208   :  { %2598 = vmatprep.subr.bf16.mxu1 %v2719_v36 }
 0x20b   :  { %2599 = vmatpush3.bf16.msra.mxu1 %v2719_v36 }
 0x20c   :  { %2604 = vmatprep.subr.bf16.mxu1 %v2720_v57 }
 0x2b6   :  { %v2594_v40 = vpop.f32.mrf.mxu0  ;;  %v2570_v63 = vpop.f32.mrf.mxu1 }
 0x2b8   :  { %v1087_v37 = vpop.f32.mrf.mxu0  ;;  %v973_v41 = vpop.f32.mrf.mxu1 }
 0x2ba   :  { %v2595_v2 = vpop.f32.mrf.mxu0  ;;  %v2571_v4 = vpop.f32.mrf.mxu1 }
 0x2bb   :  { %v1103_v46 = vpack.c.bf16 %v2595_v2, %v2594_v40  ;;  %v989_v14 = vpack.c.bf16 %v2571_v4, %v2570_v63 }
 0x2bc   :  { %v1090_v3 = vpop.f32.mrf.mxu0  ;;  %v976_v58 = vpop.f32.mrf.mxu1 }
 0x2bd   :  { %v1102_v53 = vpack.c.bf16 %v1090_v3, %v1087_v37  ;;  %v988_v13 = vpack.c.bf16 %v976_v58, %v973_v41 }
 0x2bf   :  { %2616 = vmatprep.mubr.msk.bf16.mxu0 %vm754_vm6, %v1102_v53 }
 0x2c0   :  { %2617 = vmatmul.mubr.msk.bf16.vlgmr.msra.gmra.mxu0 %vm754_vm6, %v1103_v46 }
 0x2c1   :  { %2632 = vmatprep.mubr.msk.bf16.mxu0 %vm2745_vm10, %v2744_v29 }
 0x2c6   :  { %v2582_v59 = vpop.f32.mrf.mxu1 }
 0x2c8   :  { %v1030_v5 = vpop.f32.mrf.mxu1 }
 0x2ca   :  { %v2583_v0 = vpop.f32.mrf.mxu1 }
 0x2cb   :  { %v1046_v12 = vpack.c.bf16 %v2583_v0, %v2582_v59 }
 0x2cc   :  { %v1033_v6 = vpop.f32.mrf.mxu1 }
 0x2cd   :  { %v1045_v9 = vpack.c.bf16 %v1033_v6, %v1030_v5 }
 0x2cf   :  { %2600 = vmatprep.mubr.msk.bf16.mxu1 %vm754_vm6, %v1045_v9 }
 0x2d0   :  { %2601 = vmatmul.mubr.msk.bf16.vlgmr.msra.gmra.mxu1 %vm754_vm6, %v1046_v12 }
 0x2d1   :  { %2605 = vmatpush3.bf16.msra.mxu1 %v2720_v57  ;;  %2608 = vmatprep.mubr.msk.bf16.mxu1 %vm754_vm6, %v988_v13 }
 0x2d2   :  { %2606 = vmatprep.subr.bf16.mxu1 %v2721_v35 }
 0x2d5   :  { %2607 = vmatpush3.bf16.msra.mxu1 %v2721_v35 }
 0x2d6   :  { %2620 = vmatprep.subr.bf16.mxu1 %v2744_v29 }
 0x2d8   :  { %2609 = vmatmul.mubr.msk.bf16.vlgmr.msra.gmra.mxu1 %vm754_vm6, %v989_v14 }
 0x2d9   :  { %2624 = vmatprep.mubr.msk.bf16.mxu1 %vm2745_vm10, %v2744_v29 }
 0x380   :  { %v2618_v42 = vpop.f32.mrf.mxu0 }
 0x382   :  { %v1302_v26 = vpop.f32.mrf.mxu0 }
 0x384   :  { %v2619_v52 = vpop.f32.mrf.mxu0 }
 0x386   :  { %v1305_v61 = vpop.f32.mrf.mxu0 }
 0x390   :  { %v2602_v15 = vpop.f32.mrf.mxu1 }
 0x392   :  { %v1164_v19 = vpop.f32.mrf.mxu1 }
 0x394   :  { %v2603_v22 = vpop.f32.mrf.mxu1 }
 0x396   :  { %v1167_v38 = vpop.f32.mrf.mxu1 }
 0x398   :  { %v2610_v28 = vpop.f32.mrf.mxu1 }
 0x399   :  { %v1240_v45 = vadd.f32 %v2610_v28, %v2602_v15 }
 0x39a   :  { %v1231_v11 = vpop.f32.mrf.mxu1 }
 0x39b   :  { %v1232_v10 = vadd.f32 %v1231_v11, %v1164_v19  ;;  %v1319_v8 = vadd.f32 %v2618_v42, %v1240_v45 }
 0x39c   :  { %v2611_v47 = vpop.f32.mrf.mxu1 }
 0x39d   :  { %v1317_v27 = vadd.f32 %v1302_v26, %v1232_v10  ;;  %v1243_v33 = vadd.f32 %v2611_v47, %v2603_v22  ;;  %v1324_v1 = vsel %vm754_vm6, %v1319_v8, 0.0  ;;  %v1357_v26 = vld [vmem:[%s3513_s5] sm:$0x1] }
 0x39e   :  { %v1234_v48 = vpop.f32.mrf.mxu1  ;;  %v1361_v10 = vld [vmem:[%s3514_s6] sm:$0x1] }
 0x39f   :  { %v1235_v49 = vadd.f32 %v1234_v48, %v1167_v38  ;;  %v1321_v50 = vsel %vm754_vm6, %v1317_v27, 0.0  ;;  %v1320_v51 = vadd.f32 %v2619_v52, %v1243_v33 }
 0x3a1   :  { %v1318_v60 = vadd.f32 %v1305_v61, %v1235_v49  ;;  %v1326_v20 = vsel %vm754_vm6, %v1320_v51, 0.0 }
 0x3a3   :  { %v1322_v43 = vsel %vm754_vm6, %v1318_v60, 0.0 }
 0x3a4   :  { %v1323_v44 = vadd.f32 %v1322_v43, %v1321_v50 }
 0x3a6   :  { %v1325_v55 = vadd.f32 %v1324_v1, %v1323_v44 }
 0x3a8   :  { %v1327_v24 = vadd.f32 %v1326_v20, %v1325_v55 }
 0x3aa   :  { %v1328_v56 = vrot.slane %v1327_v24, 4 }
 0x3ac   :  { %v1329_v34 = vadd.f32 %v1328_v56, %v1327_v24 }
 0x3ae   :  { %v1330_v17 = vrot.slane %v1329_v34, 2 }
 0x3b0   :  { %v1331_v18 = vadd.f32 %v1330_v17, %v1329_v34 }
 0x3b2   :  { %v1332_v36 = vrot.slane %v1331_v18, 1 }
 0x3b4   :  { %v1333_v57 = vadd.f32 %v1332_v36, %v1331_v18 }
 0x3b6   :  { %v1334_v40 = vmul.f32 0.03125, %v1333_v57  ;;  %v2726_v57 = vld [vmem:[%s3515_s7 + $0x28] sm:$0xff]  }
 0x3b8   :  { %v1335_v63 = vsub.f32 %v1317_v27, %v1334_v40  ;;  %v1336_v37 = vsub.f32 %v1318_v60, %v1334_v40  ;;  %v1337_v2 = vsub.f32 %v1319_v8, %v1334_v40  ;;  %v1338_v41 = vsub.f32 %v1320_v51, %v1334_v40 }
 0x3ba   :  { %v1339_v46 = vmul.f32 %v1335_v63, %v1335_v63  ;;  %v1340_v3 = vmul.f32 %v1336_v37, %v1336_v37  ;;  %v1341_v53 = vmul.f32 %v1337_v2, %v1337_v2  ;;  %v1342_v4 = vmul.f32 %v1338_v41, %v1338_v41 }
 0x3bc   :  { %v1343_v58 = vsel %vm754_vm6, %v1339_v46, 0.0  ;;  %v1344_v59 = vsel %vm754_vm6, %v1340_v3, 0.0  ;;  %v1346_v0 = vsel %vm754_vm6, %v1341_v53, 0.0  ;;  %v1348_v9 = vsel %vm754_vm6, %v1342_v4, 0.0  ;;  %v2727_v46 = vld [vmem:[%s3515_s7 + $0x20] sm:$0xff]  }
 0x3bd   :  { %v1345_v5 = vadd.f32 %v1344_v59, %v1343_v58 }
 0x3bf   :  { %v1347_v6 = vadd.f32 %v1346_v0, %v1345_v5 }
 0x3c1   :  { %v1349_v12 = vadd.f32 %v1348_v9, %v1347_v6 }
 0x3c3   :  { %v1350_v35 = vrot.slane %v1349_v12, 4 }
 0x3c5   :  { %v1351_v13 = vadd.f32 %v1350_v35, %v1349_v12 }
 0x3c7   :  { %v1352_v14 = vrot.slane %v1351_v13, 2 }
 0x3c9   :  { %v1353_v15 = vadd.f32 %v1352_v14, %v1351_v13 }
 0x3cb   :  { %v1354_v19 = vrot.slane %v1353_v15, 1 }
 0x3cd   :  { %v1355_v42 = vadd.f32 %v1354_v19, %v1353_v15 }
 0x3cf   :  { %v1356_v22 = vmul.f32 0.03125, %v1355_v42 }
 0x3d1   :  { %v1358_v38 = vadd.f32 1e-05, %v1356_v22 }
 0x3d3   :  { %2736 = vrsqrt.f32 %v1358_v38 }
 0x3e0   :  { %v2737_v28 = vpop.eup %2736 }
 0x3e1   :  { %v1360_v11 = vmul.f32 %v2737_v28, %v1357_v26 }
 0x3e3   :  { %v1362_v52 = vmul.f32 %v1360_v11, %v1334_v40  ;;  %v1368_v47 = vrot.slane %v1360_v11, %v3274_v62 }
 0x3e5   :  { %v1363_v45 = vsub.f32 %v1361_v10, %v1362_v52  ;;  %v1371_v48 = vmul.f32 %v1368_v47, %v1318_v60  ;;  %v1372_v49 = vmul.f32 %v1368_v47, %v1319_v8  ;;  %v1373_v61 = vmul.f32 %v1368_v47, %v1320_v51 }
 0x3e6   :  { %v1370_v50 = vmul.f32 %v1368_v47, %v1317_v27 }
 0x3e7   :  { %v1378_v33 = vrot.slane %v1363_v45, %v3274_v62 }
 0x3e9   :  { %v1381_v43 = vadd.f32 %v1378_v33, %v1371_v48  ;;  %v1382_v44 = vadd.f32 %v1378_v33, %v1372_v49  ;;  %v1383_v1 = vadd.f32 %v1378_v33, %v1373_v61  ;;  %v1380_v55 = vadd.f32 %v1378_v33, %v1370_v50 }
 0x3eb   :  { %v1386_v20 = vmax.f32 %v1382_v44, 0.0  ;;  %v1387_v24 = vmax.f32 %v1383_v1, 0.0  ;;  %v1384_v34 = vmax.f32 %v1380_v55, 0.0  ;;  %v1385_v17 = vmax.f32 %v1381_v43, 0.0 }
 0x3ed   :  { %v1422_v56 = vpack.c.bf16 %v1387_v24, %v1386_v20  ;;  %v1421_v60 = vpack.c.bf16 %v1385_v17, %v1384_v34 }
 0x3ef   :  { %2621 = vmatpush3.bf16.msra.mxu1 %v1422_v56  ;;  %2629 = vmatpush3.bf16.msra.mxu0 %v1422_v56 }
 0x3f0   :  { %2622 = vmatprep.subr.bf16.mxu1 %v2744_v29  ;;  %2630 = vmatprep.subr.bf16.mxu0 %v2744_v29 }
 0x3f3   :  { %2623 = vmatpush3.bf16.msra.mxu1 %v1421_v60  ;;  %2631 = vmatpush3.bf16.msra.mxu0 %v1421_v60 }
 0x3f4   :  { %2636 = vmatprep.subr.bf16.mxu1 %v2744_v29  ;;  %2644 = vmatprep.subr.bf16.mxu0 %v2744_v29 }
 0x3f6   :  { %2625 = vmatmul.mubr.msk.bf16.vlgmr.msra.gmra.mxu1 %vm754_vm6, %v1420_v32  ;;  %2633 = vmatmul.mubr.msk.bf16.vlgmr.msra.gmra.mxu0 %vm754_vm6, %v3317_v7  ;;  %v2724_v32 = vld [vmem:[%s3515_s7 + $0x10] sm:$0xff]  }
 0x3f7   :  { %2637 = vmatpush3.bf16.msra.mxu1 %v1422_v56  ;;  %2640 = vmatprep.mubr.msk.bf16.mxu1 %vm2745_vm10, %v2744_v29 }
 0x3f8   :  { %2638 = vmatprep.subr.bf16.mxu1 %v2744_v29  ;;  %2648 = vmatprep.mubr.msk.bf16.mxu0 %vm2745_vm10, %v2744_v29 }
 0x3f9   :  { %2645 = vmatpush3.bf16.msra.mxu0 %v2722_v30 }
 0x3fa   :  { %2646 = vmatprep.subr.bf16.mxu0 %v2744_v29 }
 0x3fb   :  { %2639 = vmatpush3.bf16.msra.mxu1 %v1421_v60 }
 0x3fc   :  { %2652 = vmatprep.subr.bf16.mxu1 %v2744_v29 }
 0x3fd   :  { %2647 = vmatpush3.bf16.msra.mxu0 %v2724_v32 }
 0x3fe   :  { %2641 = vmatmul.mubr.msk.bf16.vlgmr.msra.gmra.mxu1 %vm754_vm6, %v3217_v39  ;;  %v2725_v39 = vld [vmem:[%s3515_s7] sm:$0xff]   ;;  %2660 = vmatprep.subr.bf16.mxu0 %v2744_v29 }
 0x3ff   :  { %2656 = vmatprep.mubr.msk.bf16.mxu1 %vm2745_vm10, %v2744_v29  ;;  %2653 = vmatpush3.bf16.msra.mxu1 %v2723_v31 }
 0x400   :  { %2654 = vmatprep.subr.bf16.mxu1 %v2744_v29 }
 0x403   :  { %2655 = vmatpush3.bf16.msra.mxu1 %v2725_v39 }
 0x404   :  { %2668 = vmatprep.subr.bf16.mxu1 %v2744_v29 }
 0x4b6   :  { %v1460_v7 = vpop.f32.mrf.mxu1  ;;  %v1504_v27 = vpop.f32.mrf.mxu0 }
 0x4b8   :  { %v2626_v8 = vpop.f32.mrf.mxu1  ;;  %v2634_v51 = vpop.f32.mrf.mxu0 }
 0x4b9   :  { %v1791_v51 = vand.u32 3, %v2868_v16 }
 0x4ba   :  { %v1463_v18 = vpop.f32.mrf.mxu1  ;;  %v1507_v36 = vpop.f32.mrf.mxu0 }
 0x4bb   :  { %v1467_v40 = vpack.c.bf16 %v1463_v18, %v1460_v7  ;;  %v1511_v63 = vpack.c.bf16 %v1507_v36, %v1504_v27  ;;  %v1762_v27 = vld [vmem:[%s3517_s8] sm:$0x1]  ;;  %vm1799_vm11 = vcmp.ne.s32.totalorder %v1791_v51, 0 }
 0x4bc   :  { %v2627_v37 = vpop.f32.mrf.mxu1  ;;  %v2635_v2 = vpop.f32.mrf.mxu0  ;;  %v1766_v36 = vld [vmem:[%s3518_s9] sm:$0x1]  ;;  %vm1800_vm12 = vmand %vm200_vm1, %vm1799_vm11  ;;  %vm2177_vm1 = vcmask 7168  }
 0x4bd   :  { %2649 = vmatmul.mubr.msk.bf16.vlgmr.msra.gmra.mxu0 %vm754_vm6, %v1511_v63  ;;  %2657 = vmatmul.mubr.msk.bf16.vlgmr.msra.gmra.mxu1 %vm754_vm6, %v1467_v40 }
 0x4be   :  { %v1548_v41 = vpop.f32.mrf.mxu1  ;;  %2661 = vmatpush3.bf16.msra.mxu0 %v2726_v57  ;;  %2664 = vmatprep.mubr.msk.bf16.mxu0 %vm2745_vm10, %v2744_v29 }
 0x4bf   :  { %2662 = vmatprep.subr.bf16.mxu0 %v2744_v29  ;;  %2670 = vmatprep.mubr.msk.bf16.mxu1 %vm2745_vm10, %v2744_v29 }
 0x4c0   :  { %v2642_v3 = vpop.f32.mrf.mxu1 }
 0x4c1   :  { %v2278_v3 = vsel %vm1800_vm12, 1.0, %v2744_v29 }
 0x4c2   :  { %v1551_v53 = vpop.f32.mrf.mxu1  ;;  %2663 = vmatpush3.bf16.msra.mxu0 %v2727_v46 }
 0x4c3   :  { %v1555_v4 = vpack.c.bf16 %v1551_v53, %v1548_v41  ;;  %2674 = vmatprep.subr.bf16.mxu0 %v2744_v29 }
 0x4c4   :  { %v2643_v58 = vpop.f32.mrf.mxu1 }
 0x4c5   :  { %2665 = vmatmul.mubr.msk.bf16.vlgmr.msra.gmra.mxu0 %vm754_vm6, %v1555_v4 }
 0x4c6   :  { %2676 = vmatprep.mubr.msk.bf16.mxu0 %vm2745_vm10, %v2744_v29 }
 0x57d   :  { %v1613_v59 = vpop.f32.mrf.mxu0  ;;  %v1669_v5 = vpop.f32.mrf.mxu1 }
 0x57e   :  { %v1670_v15 = vadd.f32 %v1669_v5, %v1613_v59  ;;  %v1804_v59 = vpack.c.bf16 %v3310_v54, %v3310_v54  ;;  %v1803_v5 = vpack.c.bf16 %v2278_v3, %v2278_v3  ;;  %v2729_v54 = vld [vmem:[%s3516_s10 + $0x8] sm:$0xff]  }
 0x57f   :  { %v2650_v0 = vpop.f32.mrf.mxu0  ;;  %v2658_v6 = vpop.f32.mrf.mxu1 }
 0x580   :  { %v2730_v0 = vld [vmem:[%s3516_s10 + $0x10] sm:$0xff]   ;;  %v2731_v6 = vld [vmem:[%s3516_s10] sm:$0xff]  }
 0x581   :  { %v1616_v9 = vpop.f32.mrf.mxu0  ;;  %v1672_v12 = vpop.f32.mrf.mxu1 }
 0x582   :  { %v1673_v42 = vadd.f32 %v1672_v12, %v1616_v9  ;;  %v2732_v12 = vld [vmem:[%s3516_s10 + $0x28] sm:$0xff]  }
 0x583   :  { %v2651_v35 = vpop.f32.mrf.mxu0  ;;  %v2659_v13 = vpop.f32.mrf.mxu1 }
 0x585   :  { %v1729_v14 = vpop.f32.mrf.mxu0 }
 0x586   :  { %v1736_v22 = vadd.f32 %v1729_v14, %v1670_v15 }
 0x587   :  { %v2666_v19 = vpop.f32.mrf.mxu0 }
 0x588   :  { %v1738_v11 = vsel %vm754_vm6, %v1736_v22, 0.0 }
 0x589   :  { %v1732_v38 = vpop.f32.mrf.mxu0 }
 0x58a   :  { %v1737_v26 = vadd.f32 %v1732_v38, %v1673_v42 }
 0x58b   :  { %v2667_v28 = vpop.f32.mrf.mxu0 }
 0x58c   :  { %v1739_v10 = vsel %vm754_vm6, %v1737_v26, 0.0 }
 0x58d   :  { %v1740_v52 = vadd.f32 %v1739_v10, %v1738_v11 }
 0x58f   :  { %v1741_v47 = vrot.slane %v1740_v52, 4 }
 0x591   :  { %v1742_v45 = vadd.f32 %v1741_v47, %v1740_v52 }
 0x593   :  { %v1743_v48 = vrot.slane %v1742_v45, 2 }
 0x595   :  { %v1744_v33 = vadd.f32 %v1743_v48, %v1742_v45  ;;  %v20_v45 = vstv %s3519_s14 }
 0x596   :  { %21 = vst [vmem:[#allocation2] sm:$0x1] %v20_v45 }
 0x597   :  { %v1745_v49 = vrot.slane %v1744_v33, 1 }
 0x599   :  { %v1746_v61 = vadd.f32 %v1745_v49, %v1744_v33 }
 0x59b   :  { %v1747_v50 = vmul.f32 0.0625, %v1746_v61 }
 0x59d   :  { %v1748_v43 = vsub.f32 %v1736_v22, %v1747_v50  ;;  %v1749_v44 = vsub.f32 %v1737_v26, %v1747_v50 }
 0x59f   :  { %v1750_v1 = vmul.f32 %v1748_v43, %v1748_v43  ;;  %v1751_v55 = vmul.f32 %v1749_v44, %v1749_v44 }
 0x5a1   :  { %v1752_v20 = vsel %vm754_vm6, %v1750_v1, 0.0  ;;  %v1753_v24 = vsel %vm754_vm6, %v1751_v55, 0.0 }
 0x5a2   :  { %v1754_v56 = vadd.f32 %v1753_v24, %v1752_v20 }
 0x5a4   :  { %v1755_v34 = vrot.slane %v1754_v56, 4 }
 0x5a6   :  { %v1756_v17 = vadd.f32 %v1755_v34, %v1754_v56 }
 0x5a8   :  { %v1757_v60 = vrot.slane %v1756_v17, 2 }
 0x5aa   :  { %v1758_v30 = vadd.f32 %v1757_v60, %v1756_v17 }
 0x5ac   :  { %v1759_v31 = vrot.slane %v1758_v30, 1 }
 0x5ae   :  { %v1760_v32 = vadd.f32 %v1759_v31, %v1758_v30 }
 0x5b0   :  { %v1761_v39 = vmul.f32 0.0625, %v1760_v32 }
 0x5b2   :  { %v1763_v7 = vadd.f32 1e-05, %v1761_v39 }
 0x5b4   :  { %2738 = vrsqrt.f32 %v1763_v7 }
 0x5c1   :  { %v2739_v8 = vpop.eup %2738 }
 0x5c2   :  { %v1765_v18 = vmul.f32 %v2739_v8, %v1762_v27 }
 0x5c4   :  { %v1767_v57 = vmul.f32 %v1765_v18, %v1747_v50  ;;  %v1773_v40 = vrot.slane %v1765_v18, %v3274_v62 }
 0x5c6   :  { %v1768_v63 = vsub.f32 %v1766_v36, %v1767_v57  ;;  %v1775_v37 = vmul.f32 %v1773_v40, %v1736_v22  ;;  %v1776_v2 = vmul.f32 %v1773_v40, %v1737_v26  ;;  %v2733_v22 = vld [vmem:[%s3516_s10 + $0x20] sm:$0xff]  }
 0x5c8   :  { %v1781_v41 = vrot.slane %v1768_v63, %v3274_v62 }
 0x5ca   :  { %v1784_v46 = vadd.f32 %v1781_v41, %v1776_v2  ;;  %v1783_v16 = vadd.f32 %v1781_v41, %v1775_v37 }
 0x5cc   :  { %v1786_v53 = vmax.f32 %v1784_v46, 0.0  ;;  %v1785_v4 = vmax.f32 %v1783_v16, 0.0  ;;  %v2136_v16 = vld [vmem:[%s3520_s11] sm:$0x1] }
 0x5ce   :  { %v1806_v58 = vpack.c.bf16 %v1786_v53, %v1785_v4  ;;  %v2140_v4 = vld [vmem:[%s3521_s12] sm:$0x1] }
 0x5d0   :  { %2669 = vmatpush3.bf16.msra.mxu1 %v1806_v58  ;;  %2675 = vmatpush3.bf16.msra.mxu0 %v1806_v58 }
 0x5d1   :  { %2680 = vmatprep.subr.bf16.mxu1 %v2744_v29  ;;  %2686 = vmatprep.subr.bf16.mxu0 %v2744_v29 }
 0x5d3   :  { %2671 = vmatmul.mubr.msk.bf16.vlgmr.msra.gmra.mxu1 %vm1807_vm13, %v1803_v5  ;;  %2677 = vmatmul.mubr.msk.bf16.vlgmr.msra.gmra.mxu0 %vm1807_vm13, %v1804_v59 }
 0x5d4   :  { %2681 = vmatpush3.bf16.msra.mxu1 %v1806_v58  ;;  %2682 = vmatprep.mubr.msk.bf16.mxu1 %vm2745_vm10, %v2744_v29 }
 0x5d5   :  { %2694 = vmatprep.subr.bf16.mxu1 %v2744_v29  ;;  %2687 = vmatpush3.bf16.msra.mxu0 %v2728_v21 }
 0x5d6   :  { %2688 = vmatprep.subr.bf16.mxu0 %v2744_v29  ;;  %2690 = vmatprep.mubr.msk.bf16.mxu0 %vm2745_vm10, %v2744_v29 }
 0x5d9   :  { %2689 = vmatpush3.bf16.msra.mxu0 %v2730_v0  ;;  %v2291_v0 = vld [vmem:[%s3522_s13] ss:$0 sm:$0xff] }
 0x5da   :  { %2702 = vmatprep.subr.bf16.mxu0 %v2744_v29 }
 0x5db   :  { %2683 = vmatmul.mubr.msk.bf16.vlgmr.msra.gmra.mxu1 %vm1807_vm13, %v1805_v23 }
 0x5dc   :  { %2695 = vmatpush3.bf16.msra.mxu1 %v2729_v54  ;;  %2698 = vmatprep.mubr.msk.bf16.mxu1 %vm2745_vm10, %v2744_v29 }
 0x5dd   :  { %2696 = vmatprep.subr.bf16.mxu1 %v2744_v29 }
 0x5e0   :  { %2697 = vmatpush3.bf16.msra.mxu1 %v2731_v6 }
 0x693   :  { %v1845_v25 = vpop.f32.mrf.mxu1  ;;  %v1889_v9 = vpop.f32.mrf.mxu0 }
 0x694   :  { %v1851_v35 = vpack.c.bf16 %v1845_v25, %v1845_v25  ;;  %v1895_v13 = vpack.c.bf16 %v1889_v9, %v1889_v9 }
 0x695   :  { %v2672_v14 = vpop.f32.mrf.mxu1  ;;  %v2678_v15 = vpop.f32.mrf.mxu0 }
 0x696   :  { %2691 = vmatmul.mubr.msk.bf16.vlgmr.msra.gmra.mxu0 %vm754_vm6, %v1895_v13  ;;  %2699 = vmatmul.mubr.msk.bf16.vlgmr.msra.gmra.mxu1 %vm754_vm6, %v1851_v35 }
 0x697   :  { %v1848_v19 = vpop.f32.mrf.mxu1  ;;  %v1892_v42 = vpop.f32.mrf.mxu0  ;;  %2703 = vmatpush3.bf16.msra.mxu0 %v2732_v12  ;;  %2706 = vmatprep.mubr.msk.bf16.mxu0 %vm2745_vm10, %v2744_v29  ;;  %v2292_v12 = vld [vmem:[#allocation2] ss:$0 sm:$0xff] }
 0x698   :  { %2704 = vmatprep.subr.bf16.mxu0 %v2744_v29 }
 0x699   :  { %v2673_v38 = vpop.f32.mrf.mxu1  ;;  %v2679_v26 = vpop.f32.mrf.mxu0 }
 0x69b   :  { %v1933_v28 = vpop.f32.mrf.mxu1  ;;  %2705 = vmatpush3.bf16.msra.mxu0 %v2733_v22 }
 0x69c   :  { %v1939_v11 = vpack.c.bf16 %v1933_v28, %v1933_v28 }
 0x69d   :  { %v2684_v10 = vpop.f32.mrf.mxu1 }
 0x69e   :  { %2707 = vmatmul.mubr.msk.bf16.vlgmr.msra.gmra.mxu0 %vm754_vm6, %v1939_v11 }
 0x69f   :  { %v1936_v52 = vpop.f32.mrf.mxu1 }
 0x6a1   :  { %v2685_v47 = vpop.f32.mrf.mxu1 }
 0x756   :  { %v1997_v48 = vpop.f32.mrf.mxu0  ;;  %v2052_v33 = vpop.f32.mrf.mxu1 }
 0x757   :  { %v2053_v1 = vadd.f32 %v2052_v33, %v1997_v48 }
 0x758   :  { %v2692_v49 = vpop.f32.mrf.mxu0  ;;  %v2700_v61 = vpop.f32.mrf.mxu1 }
 0x75a   :  { %v2000_v29 = vpop.f32.mrf.mxu0  ;;  %v2055_v50 = vpop.f32.mrf.mxu1 }
 0x75c   :  { %v2693_v43 = vpop.f32.mrf.mxu0  ;;  %v2701_v44 = vpop.f32.mrf.mxu1 }
 0x75e   :  { %v2111_v55 = vpop.f32.mrf.mxu0 }
 0x75f   :  { %v2117_v20 = vadd.f32 %v2111_v55, %v2053_v1 }
 0x760   :  { %v2708_v24 = vpop.f32.mrf.mxu0 }
 0x761   :  { %v2118_v56 = vsel %vm754_vm6, %v2117_v20, 0.0 }
 0x762   :  { %v2119_v34 = vrot.slane %v2118_v56, 4  ;;  %v2114_v17 = vpop.f32.mrf.mxu0 }
 0x764   :  { %v2120_v60 = vadd.f32 %v2119_v34, %v2118_v56  ;;  %v2709_v30 = vpop.f32.mrf.mxu0 }
 0x766   :  { %v2121_v31 = vrot.slane %v2120_v60, 2 }
 0x768   :  { %v2122_v32 = vadd.f32 %v2121_v31, %v2120_v60 }
 0x76a   :  { %v2123_v39 = vrot.slane %v2122_v32, 1 }
 0x76c   :  { %v2124_v7 = vadd.f32 %v2123_v39, %v2122_v32 }
 0x76e   :  { %v2125_v27 = vmul.f32 0.125, %v2124_v7 }
 0x770   :  { %v2126_v8 = vsub.f32 %v2117_v20, %v2125_v27 }
 0x772   :  { %v2127_v51 = vmul.f32 %v2126_v8, %v2126_v8 }
 0x774   :  { %v2128_v18 = vsel %vm754_vm6, %v2127_v51, 0.0 }
 0x775   :  { %v2129_v36 = vrot.slane %v2128_v18, 4 }
 0x777   :  { %v2130_v57 = vadd.f32 %v2129_v36, %v2128_v18 }
 0x779   :  { %v2131_v40 = vrot.slane %v2130_v57, 2 }
 0x77b   :  { %v2132_v63 = vadd.f32 %v2131_v40, %v2130_v57 }
 0x77d   :  { %v2133_v37 = vrot.slane %v2132_v63, 1 }
 0x77f   :  { %v2134_v2 = vadd.f32 %v2133_v37, %v2132_v63 }
 0x781   :  { %v2135_v41 = vmul.f32 0.125, %v2134_v2 }
 0x783   :  { %v2137_v46 = vadd.f32 1e-05, %v2135_v41 }
 0x785   :  { %2740 = vrsqrt.f32 %v2137_v46 }
 0x792   :  { %v2741_v3 = vpop.eup %2740 }
 0x793   :  { %v2139_v53 = vmul.f32 %v2741_v3, %v2136_v16 }
 0x795   :  { %v2141_v58 = vmul.f32 %v2139_v53, %v2125_v27  ;;  %v2147_v59 = vrot.slane %v2139_v53, %v3274_v62 }
 0x797   :  { %v2142_v5 = vsub.f32 %v2140_v4, %v2141_v58  ;;  %v2149_v21 = vmul.f32 %v2147_v59, %v2117_v20 }
 0x799   :  { %v2154_v23 = vrot.slane %v2142_v5, %v3274_v62 }
 0x79b   :  { %v2156_v54 = vadd.f32 %v2154_v23, %v2149_v21 }
 0x79d   :  { %v2157_v6 = vmax.f32 %v2156_v54, 0.0 }
 0x79f   :  { %v2165_v25 = vmul.f32 %v2291_v0, %v2157_v6 }
 0x7a1   :  { %v2166_v9 = vsel %vm754_vm6, %v2165_v25, 0.0 }
 0x7a2   :  { %2167 = vadd.xlane.f32.xlu0 %v2166_v9 }
 0x82b   :  { %v2168_v35 = vpop.xlane.xlu0 %2167 }
 0x82c   :  { %v2176_v13 = vadd.f32 %v2292_v12, %v2168_v35 }
 0x82e   :  { %2178 = vst.msk [vmem:[%s3523_s15] sm:$0xff] %vm2177_vm1, %v2176_v13 }

</bundles_post_ra>
